<compile_context>
chip_gen: v6e
topology: v6e:2x2x1
jax: 0.10.0
libtpu: 0.0.40
codegen_flags: <defaults>
</compile_context>

<pallas_src>
import functools
from itertools import combinations

import jax
import jax.numpy as jnp
from jax.experimental import pallas as pl
from jax.experimental.pallas import tpu as pltpu


# -----------------------------------------------------------------------------
# Kernel 1: Gram-trick squared distances + in-kernel kNN (on d^2) + anchor-coord
#           gather + squared intra-anchor features.
# -----------------------------------------------------------------------------
def point_kernel(xq_ref, xt_ref, asq_ref, x_ref, idx_ref, pf_ref, *,
                 anchor_points, neighbor_num, tile_rows, gather_chunk):
    A = anchor_points
    K = neighbor_num
    TM = tile_rows
    N = x_ref.shape[0]
    AW = A * 8
    Ci = A * (A - 1) // 2
    PFW = pf_ref.shape[1]

    row_start = pl.multiple_of(pl.program_id(1) * TM, TM)

    # ---- squared pairwise distances, query tile x all points (MXU Gram trick) ----
    xq = xq_ref[...]                                         # (TM, 8) query rows
    qsq = jnp.sum(xq * xq, axis=-1, keepdims=True)           # (TM, 1)
    gram = jnp.dot(xq, xt_ref[...],
                   preferred_element_type=jnp.float32)       # (TM, N)
    d2 = jnp.maximum(qsq + asq_ref[...] - 2.0 * gram, 0.0)   # (TM, N) squared dists
    col = jax.lax.broadcasted_iota(jnp.int32, (TM, N), 1)
    row_g = row_start + jax.lax.broadcasted_iota(jnp.int32, (TM, N), 0)
    is_self = col == row_g

    # ---- K nearest neighbours selected on SQUARED distances (no full sqrt) ----
    big = jnp.float32(3.0e38)
    dm = jnp.where(is_self, big, d2)
    idx_cols = [row_start + jax.lax.broadcasted_iota(jnp.int32, (TM, 1), 0)]  # self
    d2_sel = []                                               # squared dists of picks 1..K-1
    for _ in range(K - 1):
        m = jnp.min(dm, axis=-1, keepdims=True)                              # (TM, 1)
        sel = jnp.min(jnp.where(dm == m, col, N), axis=-1, keepdims=True)    # (TM, 1)
        idx_cols.append(sel)
        d2_sel.append(m)
        dm = jnp.where(col == sel, big, dm)
    nbr_idx = jnp.concatenate(idx_cols, axis=-1)              # (TM, K) ascending distance
    idx_ref[...] = nbr_idx
    # TODO(synk): for very large N (>~16k) switch to a streaming top-K over column
    # chunks so the (TM, N) block never has to be fully resident in VMEM.

    # ---- anchor coordinate gather: per-anchor 2D one-hot matmuls, chunked over N ----
    # anchor 0 is the point itself -> its coordinates are just xq (no gather needed).
    anchor_acc = [jnp.zeros((TM, 8), jnp.float32) for _ in range(A - 1)]
    for c0 in range(0, N, gather_chunk):
        nc = min(gather_chunk, N - c0)
        cols = c0 + jax.lax.broadcasted_iota(jnp.int32, (TM, nc), 1)
        xc = x_ref[c0:c0 + nc, :]                              # (nc, 8)
        for a in range(1, A):
            oh = (idx_cols[a] == cols).astype(jnp.float32)     # (TM, nc) exact one-hot
            anchor_acc[a - 1] = anchor_acc[a - 1] + jnp.dot(
                oh, xc, preferred_element_type=jnp.float32)
    axf = jnp.concatenate([xq] + anchor_acc, axis=-1)          # (TM, A*8) anchor coords

    # ---- intra-anchor SQUARED dists (sqrt deferred to kernel 2's single wide sqrt) ----
    parts = list(d2_sel[:A - 1])                               # d^2(point, anchor_1..A-1)
    for pi, pj in combinations(range(1, A), 2):
        dd = axf[:, pi * 8:(pi + 1) * 8] - axf[:, pj * 8:(pj + 1) * 8]
        parts.append(jnp.sum(dd * dd, axis=-1, keepdims=True))
    intra2 = jnp.concatenate(parts, axis=-1)                   # (TM, Ci)

    pieces = [axf, intra2]
    pad = PFW - AW - Ci
    if pad > 0:
        pieces.append(jnp.zeros((TM, pad), jnp.float32))
    pf_ref[...] = jnp.concatenate(pieces, axis=-1)             # (TM, PFW) point record


# -----------------------------------------------------------------------------
# Kernel 2: gather neighbour records (chunked one-hot matmul), wide-slab inter-
#           anchor distances, single wide sqrt, lane-dense (K*CPad = 128) store.
# -----------------------------------------------------------------------------
def feature_kernel(pf_ref, idx_ref, o_ref, *,
                   anchor_points, neighbor_num, tile_rows, c_pad, gather_chunk):
    A = anchor_points
    K = neighbor_num
    TM = tile_rows
    N = pf_ref.shape[0]
    PFW = pf_ref.shape[1]
    AW = A * 8
    Ci = A * (A - 1) // 2
    AA = A * A
    AA8 = AA * 8
    CP = c_pad

    row_start = pl.multiple_of(pl.program_id(1) * TM, TM)
    pf_q = pf_ref[pl.ds(row_start, TM), :]                     # (TM, PFW) this tile's records

    # ---- gather neighbour records: one-hot matmul, chunked over the N axis ----
    # The one-hot is built as (TM, K, Nc) (K == 8 -> no sublane padding) and the
    # leading dims are merged (last dim unchanged -> layout-preserving reshape).
    nidx = idx_ref[...]                                        # (TM, K)
    gathered = jnp.zeros((TM * K, PFW), jnp.float32)
    for c0 in range(0, N, gather_chunk):
        nc = min(gather_chunk, N - c0)
        cols = c0 + jax.lax.broadcasted_iota(jnp.int32, (TM, K, nc), 2)
        oh = (nidx[:, :, None] == cols).astype(jnp.float32).reshape(TM * K, nc)
        gathered = gathered + jnp.dot(oh, pf_ref[c0:c0 + nc, :],
                                      preferred_element_type=jnp.float32)

    # ---- tiny 0/1 selection matrices (built from iota once per step; a few KB) ----
    # eq/en expand anchor coords so that all A*A (query-anchor, nbr-anchor) pairs sit
    # side by side in a 72-lane slab; red does the per-pair sum-of-8 on the MXU and
    # places it at output channel 2*Ci + pair; put_center / put_nbr place the squared
    # intra features at channels [0,Ci) / [Ci,2Ci).
    r = jax.lax.broadcasted_iota(jnp.int32, (PFW, AA8), 0)
    c = jax.lax.broadcasted_iota(jnp.int32, (PFW, AA8), 1)
    coord_row = r < AW
    same_d = (r % 8) == (c % 8)
    c_pair = c // 8
    eq = (coord_row & same_d & ((r // 8) == c_pair // A)).astype(jnp.float32)
    en = (coord_row & same_d & ((r // 8) == c_pair % A)).astype(jnp.float32)

    rr = jax.lax.broadcasted_iota(jnp.int32, (AA8, CP), 0)
    rc = jax.lax.broadcasted_iota(jnp.int32, (AA8, CP), 1)
    red = (rc == 2 * Ci + rr // 8).astype(jnp.float32)

    sr = jax.lax.broadcasted_iota(jnp.int32, (PFW, CP), 0)
    sc = jax.lax.broadcasted_iota(jnp.int32, (PFW, CP), 1)
    intra_row = (sr >= AW) & (sr < AW + Ci)
    put_center = (intra_row & (sc == sr - AW)).astype(jnp.float32)
    put_nbr = (intra_row & (sc == sr - AW + Ci)).astype(jnp.float32)

    # ---- wide-slab inter-anchor distances + channel placement (all MXU work) ----
    q_exp = jnp.dot(pf_q, eq, preferred_element_type=jnp.float32)        # (TM, AA8)
    n_exp = jnp.dot(gathered, en, preferred_element_type=jnp.float32)    # (TM*K, AA8)
    diff = q_exp[:, None, :] - n_exp.reshape(TM, K, AA8)                 # (TM, K, AA8)
    sq = diff * diff
    inter2 = jnp.dot(sq.reshape(TM * K, AA8), red,
                     preferred_element_type=jnp.float32)                 # (TM*K, CP)
    center2 = jnp.dot(pf_q, put_center, preferred_element_type=jnp.float32)   # (TM, CP)
    nbr2 = jnp.dot(gathered, put_nbr, preferred_element_type=jnp.float32)     # (TM*K, CP)

    total2 = (inter2.reshape(TM, K, CP) + nbr2.reshape(TM, K, CP)
              + center2[:, None, :])                                     # disjoint channels

    # lane-dense 128-wide assembly (K slices of CP lanes) + ONE wide sqrt, then store.
    flat = jnp.concatenate([total2[:, k, :] for k in range(K)], axis=-1)  # (TM, K*CP)
    o_ref[...] = jnp.sqrt(flat)                                           # pad channels stay 0


# -----------------------------------------------------------------------------
# Wrapper
# -----------------------------------------------------------------------------
def _round_up(x, m):
    return ((x + m - 1) // m) * m


def rotation_invariant_dist_fea(xyz, neighbor_num=8, anchor_points=3):
    assert xyz.ndim == 3 and xyz.shape[2] == 3
    assert anchor_points >= 3 and anchor_points < neighbor_num
    B, N, _ = xyz.shape
    K, A = neighbor_num, anchor_points
    assert N >= K, "need at least as many points as neighbors"

    Ci = A * (A - 1) // 2
    C = 2 * Ci + A * A                       # 15 for A=3
    AW = A * 8
    PFW = AW + _round_up(Ci, 8)              # point-record width, lane padded (32 for A=3)
    CP = _round_up(C, 8)                     # per-neighbour channels, padded (15 -> 16)

    # row tile: 128 when possible, otherwise N rounded up to a sublane multiple;
    # N is padded to a multiple of TM with far-away sentinel points (never selected
    # as neighbours of real points) instead of falling back to a full-N tile.
    TM = 128 if N >= 128 else _round_up(N, 8)
    Np = _round_up(N, TM)
    CHUNK = min(Np, 512)                     # contraction chunk for the one-hot gathers

    xyz = xyz.astype(jnp.float32)
    if Np > N:
        sentinel = jnp.full((B, Np - N, 3), 1.0e6, jnp.float32)
        xyz = jnp.concatenate([xyz, sentinel], axis=1)

    # coords zero-padded 3 -> 8 (distances unchanged); the transposed copy and the
    # squared norms are precomputed once here instead of per grid step in the kernel.
    xyz_pad = jnp.pad(xyz, ((0, 0), (0, 0), (0, 5)))               # (B, Np, 8)
    xyz_t = jnp.transpose(xyz_pad, (0, 2, 1))                      # (B, 8, Np)
    sq_norm = jnp.sum(xyz_pad * xyz_pad, axis=-1)[:, None, :]      # (B, 1, Np)

    grid = (B, Np // TM)
    cparams = pltpu.CompilerParams(
        dimension_semantics=("parallel", "parallel"),
        vmem_limit_bytes=32 * 1024 * 1024)   # v5e default scoped limit is only 16 MiB

    nbr_idx, point_fea = pl.pallas_call(
        functools.partial(point_kernel, anchor_points=A, neighbor_num=K,
                          tile_rows=TM, gather_chunk=CHUNK),
        grid=grid,
        in_specs=[
            pl.BlockSpec((None, TM, 8), lambda b, i: (b, i, 0)),    # query rows
            pl.BlockSpec((None, 8, Np), lambda b, i: (b, 0, 0)),    # coords^T (Gram RHS)
            pl.BlockSpec((None, 1, Np), lambda b, i: (b, 0, 0)),    # squared norms
            pl.BlockSpec((None, Np, 8), lambda b, i: (b, 0, 0)),    # coords (gather RHS)
        ],
        out_specs=[
            pl.BlockSpec((None, TM, K), lambda b, i: (b, i, 0)),
            pl.BlockSpec((None, TM, PFW), lambda b, i: (b, i, 0)),
        ],
        out_shape=[
            jax.ShapeDtypeStruct((B, Np, K), jnp.int32),
            jax.ShapeDtypeStruct((B, Np, PFW), jnp.float32),
        ],
        compiler_params=cparams,
    )(xyz_pad, xyz_t, sq_norm, xyz_pad)

    feat_flat = pl.pallas_call(
        functools.partial(feature_kernel, anchor_points=A, neighbor_num=K,
                          tile_rows=TM, c_pad=CP, gather_chunk=CHUNK),
        grid=grid,
        in_specs=[
            pl.BlockSpec((None, Np, PFW), lambda b, i: (b, 0, 0)),
            pl.BlockSpec((None, TM, K), lambda b, i: (b, i, 0)),
        ],
        out_specs=pl.BlockSpec((None, TM, K * CP), lambda b, i: (b, i, 0)),
        out_shape=jax.ShapeDtypeStruct((B, Np, K * CP), jnp.float32),
        compiler_params=cparams,
    )(point_fea, nbr_idx)

    # free row-major reshape + drop of the sentinel rows and the pad channel
    relative_feature = feat_flat[:, :N].reshape(B, N, K, CP)[..., :C]
    neighbors_idx = nbr_idx[:, :N]
    return relative_feature, neighbors_idx


# -----------------------------------------------------------------------------
# Pure-JAX reference (mirrors the PyTorch module) for the sanity check only
# -----------------------------------------------------------------------------
def _reference_impl(xyz, neighbor_num, anchor_points):
    K, A = neighbor_num, anchor_points
    Ci = A * (A - 1) // 2

    def one(pts):
        n = pts.shape[0]
        d = jnp.sqrt(jnp.sum((pts[:, None, :] - pts[None, :, :]) ** 2, axis=-1))
        neg, idx = jax.lax.top_k(-d, K)                # ascending distances, self first
        nd = -neg
        anchor = idx[:, :A]
        parts = [nd[:, 1:A]]
        for pi, pj in combinations(range(1, A), 2):
            parts.append(d[anchor[:, pi], anchor[:, pj]][:, None])
        intra = jnp.concatenate(parts, axis=-1)        # (n, Ci)
        nbr_anchor = anchor[idx]                       # (n, K, A)
        inter = d[anchor[:, None, :, None], nbr_anchor[:, :, None, :]]   # (n, K, A, A)
        inter = inter.reshape(n, K, A * A)
        center = jnp.broadcast_to(intra[:, None, :], (n, K, Ci))
        feat = jnp.concatenate([center, intra[idx], inter], axis=-1)
        return feat, idx

    return jax.vmap(one)(xyz)


if __name__ == "__main__":
    B, N = 2, 64
    neighbor_num, anchor_points = 8, 3

    key = jax.random.PRNGKey(0)
    xyz = jax.random.normal(key, (B, N, 3), dtype=jnp.float32)

    relative_feature, neighbors_idx = rotation_invariant_dist_fea(
        xyz, neighbor_num=neighbor_num, anchor_points=anchor_points)
    relative_feature = jax.block_until_ready(relative_feature)
    neighbors_idx = jax.block_until_ready(neighbors_idx)

    C = 2 * (anchor_points * (anchor_points - 1) // 2) + anchor_points ** 2
    assert relative_feature.shape == (B, N, neighbor_num, C)
    assert neighbors_idx.shape == (B, N, neighbor_num)

    # light correctness check against a pure-JAX reference (value check is skipped if a
    # near-tie flips the neighbour ordering, which torch.topk(sorted=False) leaves
    # unspecified anyway)
    ref_feat, ref_idx = _reference_impl(xyz, neighbor_num, anchor_points)
    if bool(jnp.array_equal(neighbors_idx, ref_idx)):
        err = float(jnp.max(jnp.abs(relative_feature - ref_feat)))
        assert err < 1e-3, f"feature mismatch: max abs err = {err}"

    print("KERNEL_OK")
</pallas_src>

<mosaic_0001>
module attributes {stable_mosaic.version = 11 : i64} {
  func.func @point_kernel(%arg0: i32, %arg1: i32, %arg2: memref<1x64x8xf32, #tpu.memory_space<vmem>>, %arg3: memref<1x8x64xf32, #tpu.memory_space<vmem>>, %arg4: memref<1x1x64xf32, #tpu.memory_space<vmem>>, %arg5: memref<1x64x8xf32, #tpu.memory_space<vmem>>, %arg6: memref<1x64x8xi32, #tpu.memory_space<vmem>>, %arg7: memref<1x64x32xf32, #tpu.memory_space<vmem>>) attributes {dimension_semantics = [#tpu.dimension_semantics<parallel>, #tpu.dimension_semantics<parallel>], iteration_bounds = array<i64: 2, 1>, scalar_prefetch = 0 : i64, scratch_operands = 0 : i64, tpu.core_type = #tpu.core_type<tc>, window_params = [{transform_indices = @transform_0, window_bounds = array<i64: 1, 64, 8>}, {transform_indices = @transform_1, window_bounds = array<i64: 1, 8, 64>}, {transform_indices = @transform_2, window_bounds = array<i64: 1, 1, 64>}, {transform_indices = @transform_3, window_bounds = array<i64: 1, 64, 8>}, {transform_indices = @transform_4, window_bounds = array<i64: 1, 64, 8>}, {transform_indices = @transform_5, window_bounds = array<i64: 1, 64, 32>}]} {
    %c64_i32 = arith.constant 64 : i32
    %0 = arith.muli %arg1, %c64_i32 : i32
    %1 = tpu.assume_multiple %0, 64 : i32
    %c0 = arith.constant 0 : index
    %c0_0 = arith.constant 0 : index
    %c0_1 = arith.constant 0 : index
    %2 = vector.load %arg2[%c0, %c0_0, %c0_1] : memref<1x64x8xf32, #tpu.memory_space<vmem>>, vector<1x64x8xf32>
    %3 = vector.shape_cast %2 : vector<1x64x8xf32> to vector<64x8xf32>
    %4 = arith.mulf %3, %3 : vector<64x8xf32>
    %cst = arith.constant dense<0.000000e+00> : vector<64xf32>
    %5 = vector.multi_reduction <add>, %4, %cst [1] : vector<64x8xf32> to vector<64xf32>
    %6 = vector.shape_cast %5 : vector<64xf32> to vector<64x1xf32>
    %c0_2 = arith.constant 0 : index
    %c0_3 = arith.constant 0 : index
    %c0_4 = arith.constant 0 : index
    %7 = vector.load %arg3[%c0_2, %c0_3, %c0_4] : memref<1x8x64xf32, #tpu.memory_space<vmem>>, vector<1x8x64xf32>
    %8 = vector.shape_cast %7 : vector<1x8x64xf32> to vector<8x64xf32>
    %cst_5 = arith.constant dense<0.000000e+00> : vector<64x64xf32>
    %9 = tpu.matmul %3, %8, %cst_5 {dimension_numbers = #tpu.dot_dimension_numbers<[1], [0], [0], [1], [0, 0, 1, 1], [], []>} : vector<64x8xf32>, vector<8x64xf32>, vector<64x64xf32> -> vector<64x64xf32>
    %c0_6 = arith.constant 0 : index
    %c0_7 = arith.constant 0 : index
    %c0_8 = arith.constant 0 : index
    %10 = vector.load %arg4[%c0_6, %c0_7, %c0_8] : memref<1x1x64xf32, #tpu.memory_space<vmem>>, vector<1x1x64xf32>
    %11 = vector.shape_cast %10 : vector<1x1x64xf32> to vector<1x64xf32>
    %12 = vector.broadcast %6 : vector<64x1xf32> to vector<64x64xf32>
    %13 = vector.broadcast %11 : vector<1x64xf32> to vector<64x64xf32>
    %14 = arith.addf %12, %13 : vector<64x64xf32>
    %cst_9 = arith.constant 2.000000e+00 : f32
    %15 = vector.broadcast %cst_9 : f32 to vector<64x64xf32>
    %16 = arith.mulf %15, %9 : vector<64x64xf32>
    %17 = arith.subf %14, %16 : vector<64x64xf32>
    %cst_10 = arith.constant 0.000000e+00 : f32
    %18 = vector.broadcast %cst_10 : f32 to vector<64x64xf32>
    %19 = arith.maximumf %17, %18 : vector<64x64xf32>
    %20 = tpu.iota {dimensions = array<i32: 1>} : vector<64x64xi32>
    %21 = tpu.iota {dimensions = array<i32: 0>} : vector<64x64xi32>
    %22 = vector.broadcast %1 : i32 to vector<64x64xi32>
    %23 = arith.addi %22, %21 : vector<64x64xi32>
    %24 = arith.cmpi eq, %20, %23 : vector<64x64xi32>
    %cst_11 = arith.constant 3.000000e+38 : f32
    %25 = vector.broadcast %cst_11 : f32 to vector<64x64xf32>
    %26 = arith.select %24, %25, %19 : vector<64x64xi1>, vector<64x64xf32>
    %27 = tpu.iota {dimensions = array<i32: 0>} : vector<64x1xi32>
    %28 = vector.broadcast %1 : i32 to vector<64x1xi32>
    %29 = arith.addi %28, %27 : vector<64x1xi32>
    %cst_12 = arith.constant dense<0x7F800000> : vector<64xf32>
    %30 = vector.multi_reduction <minimumf>, %26, %cst_12 [1] : vector<64x64xf32> to vector<64xf32>
    %31 = vector.shape_cast %30 : vector<64xf32> to vector<64x1xf32>
    %32 = vector.broadcast %31 : vector<64x1xf32> to vector<64x64xf32>
    %33 = arith.cmpf oeq, %26, %32 : vector<64x64xf32>
    %c64_i32_13 = arith.constant 64 : i32
    %34 = vector.broadcast %c64_i32_13 : i32 to vector<64x64xi32>
    %35 = arith.select %33, %20, %34 : vector<64x64xi1>, vector<64x64xi32>
    %cst_14 = arith.constant dense<2147483647> : vector<64xi32>
    %36 = vector.multi_reduction <minsi>, %35, %cst_14 [1] : vector<64x64xi32> to vector<64xi32>
    %37 = vector.shape_cast %36 : vector<64xi32> to vector<64x1xi32>
    %38 = vector.broadcast %37 : vector<64x1xi32> to vector<64x64xi32>
    %39 = arith.cmpi eq, %20, %38 : vector<64x64xi32>
    %cst_15 = arith.constant 3.000000e+38 : f32
    %40 = vector.broadcast %cst_15 : f32 to vector<64x64xf32>
    %41 = arith.select %39, %40, %26 : vector<64x64xi1>, vector<64x64xf32>
    %cst_16 = arith.constant dense<0x7F800000> : vector<64xf32>
    %42 = vector.multi_reduction <minimumf>, %41, %cst_16 [1] : vector<64x64xf32> to vector<64xf32>
    %43 = vector.shape_cast %42 : vector<64xf32> to vector<64x1xf32>
    %44 = vector.broadcast %43 : vector<64x1xf32> to vector<64x64xf32>
    %45 = arith.cmpf oeq, %41, %44 : vector<64x64xf32>
    %c64_i32_17 = arith.constant 64 : i32
    %46 = vector.broadcast %c64_i32_17 : i32 to vector<64x64xi32>
    %47 = arith.select %45, %20, %46 : vector<64x64xi1>, vector<64x64xi32>
    %cst_18 = arith.constant dense<2147483647> : vector<64xi32>
    %48 = vector.multi_reduction <minsi>, %47, %cst_18 [1] : vector<64x64xi32> to vector<64xi32>
    %49 = vector.shape_cast %48 : vector<64xi32> to vector<64x1xi32>
    %50 = vector.broadcast %49 : vector<64x1xi32> to vector<64x64xi32>
    %51 = arith.cmpi eq, %20, %50 : vector<64x64xi32>
    %cst_19 = arith.constant 3.000000e+38 : f32
    %52 = vector.broadcast %cst_19 : f32 to vector<64x64xf32>
    %53 = arith.select %51, %52, %41 : vector<64x64xi1>, vector<64x64xf32>
    %cst_20 = arith.constant dense<0x7F800000> : vector<64xf32>
    %54 = vector.multi_reduction <minimumf>, %53, %cst_20 [1] : vector<64x64xf32> to vector<64xf32>
    %55 = vector.shape_cast %54 : vector<64xf32> to vector<64x1xf32>
    %56 = vector.broadcast %55 : vector<64x1xf32> to vector<64x64xf32>
    %57 = arith.cmpf oeq, %53, %56 : vector<64x64xf32>
    %c64_i32_21 = arith.constant 64 : i32
    %58 = vector.broadcast %c64_i32_21 : i32 to vector<64x64xi32>
    %59 = arith.select %57, %20, %58 : vector<64x64xi1>, vector<64x64xi32>
    %cst_22 = arith.constant dense<2147483647> : vector<64xi32>
    %60 = vector.multi_reduction <minsi>, %59, %cst_22 [1] : vector<64x64xi32> to vector<64xi32>
    %61 = vector.shape_cast %60 : vector<64xi32> to vector<64x1xi32>
    %62 = vector.broadcast %61 : vector<64x1xi32> to vector<64x64xi32>
    %63 = arith.cmpi eq, %20, %62 : vector<64x64xi32>
    %cst_23 = arith.constant 3.000000e+38 : f32
    %64 = vector.broadcast %cst_23 : f32 to vector<64x64xf32>
    %65 = arith.select %63, %64, %53 : vector<64x64xi1>, vector<64x64xf32>
    %cst_24 = arith.constant dense<0x7F800000> : vector<64xf32>
    %66 = vector.multi_reduction <minimumf>, %65, %cst_24 [1] : vector<64x64xf32> to vector<64xf32>
    %67 = vector.shape_cast %66 : vector<64xf32> to vector<64x1xf32>
    %68 = vector.broadcast %67 : vector<64x1xf32> to vector<64x64xf32>
    %69 = arith.cmpf oeq, %65, %68 : vector<64x64xf32>
    %c64_i32_25 = arith.constant 64 : i32
    %70 = vector.broadcast %c64_i32_25 : i32 to vector<64x64xi32>
    %71 = arith.select %69, %20, %70 : vector<64x64xi1>, vector<64x64xi32>
    %cst_26 = arith.constant dense<2147483647> : vector<64xi32>
    %72 = vector.multi_reduction <minsi>, %71, %cst_26 [1] : vector<64x64xi32> to vector<64xi32>
    %73 = vector.shape_cast %72 : vector<64xi32> to vector<64x1xi32>
    %74 = vector.broadcast %73 : vector<64x1xi32> to vector<64x64xi32>
    %75 = arith.cmpi eq, %20, %74 : vector<64x64xi32>
    %cst_27 = arith.constant 3.000000e+38 : f32
    %76 = vector.broadcast %cst_27 : f32 to vector<64x64xf32>
    %77 = arith.select %75, %76, %65 : vector<64x64xi1>, vector<64x64xf32>
    %cst_28 = arith.constant dense<0x7F800000> : vector<64xf32>
    %78 = vector.multi_reduction <minimumf>, %77, %cst_28 [1] : vector<64x64xf32> to vector<64xf32>
    %79 = vector.shape_cast %78 : vector<64xf32> to vector<64x1xf32>
    %80 = vector.broadcast %79 : vector<64x1xf32> to vector<64x64xf32>
    %81 = arith.cmpf oeq, %77, %80 : vector<64x64xf32>
    %c64_i32_29 = arith.constant 64 : i32
    %82 = vector.broadcast %c64_i32_29 : i32 to vector<64x64xi32>
    %83 = arith.select %81, %20, %82 : vector<64x64xi1>, vector<64x64xi32>
    %cst_30 = arith.constant dense<2147483647> : vector<64xi32>
    %84 = vector.multi_reduction <minsi>, %83, %cst_30 [1] : vector<64x64xi32> to vector<64xi32>
    %85 = vector.shape_cast %84 : vector<64xi32> to vector<64x1xi32>
    %86 = vector.broadcast %85 : vector<64x1xi32> to vector<64x64xi32>
    %87 = arith.cmpi eq, %20, %86 : vector<64x64xi32>
    %cst_31 = arith.constant 3.000000e+38 : f32
    %88 = vector.broadcast %cst_31 : f32 to vector<64x64xf32>
    %89 = arith.select %87, %88, %77 : vector<64x64xi1>, vector<64x64xf32>
    %cst_32 = arith.constant dense<0x7F800000> : vector<64xf32>
    %90 = vector.multi_reduction <minimumf>, %89, %cst_32 [1] : vector<64x64xf32> to vector<64xf32>
    %91 = vector.shape_cast %90 : vector<64xf32> to vector<64x1xf32>
    %92 = vector.broadcast %91 : vector<64x1xf32> to vector<64x64xf32>
    %93 = arith.cmpf oeq, %89, %92 : vector<64x64xf32>
    %c64_i32_33 = arith.constant 64 : i32
    %94 = vector.broadcast %c64_i32_33 : i32 to vector<64x64xi32>
    %95 = arith.select %93, %20, %94 : vector<64x64xi1>, vector<64x64xi32>
    %cst_34 = arith.constant dense<2147483647> : vector<64xi32>
    %96 = vector.multi_reduction <minsi>, %95, %cst_34 [1] : vector<64x64xi32> to vector<64xi32>
    %97 = vector.shape_cast %96 : vector<64xi32> to vector<64x1xi32>
    %98 = vector.broadcast %97 : vector<64x1xi32> to vector<64x64xi32>
    %99 = arith.cmpi eq, %20, %98 : vector<64x64xi32>
    %cst_35 = arith.constant 3.000000e+38 : f32
    %100 = vector.broadcast %cst_35 : f32 to vector<64x64xf32>
    %101 = arith.select %99, %100, %89 : vector<64x64xi1>, vector<64x64xf32>
    %cst_36 = arith.constant dense<0x7F800000> : vector<64xf32>
    %102 = vector.multi_reduction <minimumf>, %101, %cst_36 [1] : vector<64x64xf32> to vector<64xf32>
    %103 = vector.shape_cast %102 : vector<64xf32> to vector<64x1xf32>
    %104 = vector.broadcast %103 : vector<64x1xf32> to vector<64x64xf32>
    %105 = arith.cmpf oeq, %101, %104 : vector<64x64xf32>
    %c64_i32_37 = arith.constant 64 : i32
    %106 = vector.broadcast %c64_i32_37 : i32 to vector<64x64xi32>
    %107 = arith.select %105, %20, %106 : vector<64x64xi1>, vector<64x64xi32>
    %cst_38 = arith.constant dense<2147483647> : vector<64xi32>
    %108 = vector.multi_reduction <minsi>, %107, %cst_38 [1] : vector<64x64xi32> to vector<64xi32>
    %109 = vector.shape_cast %108 : vector<64xi32> to vector<64x1xi32>
    %110 = tpu.concatenate %29, %37, %49, %61, %73, %85, %97, %109 in 1 : vector<64x1xi32>, vector<64x1xi32>, vector<64x1xi32>, vector<64x1xi32>, vector<64x1xi32>, vector<64x1xi32>, vector<64x1xi32>, vector<64x1xi32> -> vector<64x8xi32>
    %c0_39 = arith.constant 0 : index
    %c0_40 = arith.constant 0 : index
    %c0_41 = arith.constant 0 : index
    %111 = vector.load %arg6[%c0_39, %c0_40, %c0_41] : memref<1x64x8xi32, #tpu.memory_space<vmem>>, vector<1x64x8xi32>
    %112 = vector.shape_cast %111 : vector<1x64x8xi32> to vector<64x8xi32>
    %113 = vector.shape_cast %110 : vector<64x8xi32> to vector<1x64x8xi32>
    tpu.vector_store %arg6[%c0_39, %c0_40, %c0_41], %113 {strides = array<i32>} : memref<1x64x8xi32, #tpu.memory_space<vmem>>, vector<1x64x8xi32>,
    %cst_42 = arith.constant 0.000000e+00 : f32
    %114 = vector.broadcast %cst_42 : f32 to vector<64x8xf32>
    %cst_43 = arith.constant 0.000000e+00 : f32
    %115 = vector.broadcast %cst_43 : f32 to vector<64x8xf32>
    %116 = tpu.iota {dimensions = array<i32: 1>} : vector<64x64xi32>
    %c0_i32 = arith.constant 0 : i32
    %117 = vector.broadcast %c0_i32 : i32 to vector<64x64xi32>
    %118 = arith.addi %117, %116 : vector<64x64xi32>
    %c0_44 = arith.constant 0 : index
    %c0_45 = arith.constant 0 : index
    %c0_46 = arith.constant 0 : index
    %119 = vector.load %arg5[%c0_44, %c0_45, %c0_46] : memref<1x64x8xf32, #tpu.memory_space<vmem>>, vector<1x64x8xf32>
    %120 = vector.shape_cast %119 : vector<1x64x8xf32> to vector<64x8xf32>
    %121 = vector.broadcast %37 : vector<64x1xi32> to vector<64x64xi32>
    %122 = arith.cmpi eq, %121, %118 : vector<64x64xi32>
    %123 = arith.extui %122 : vector<64x64xi1> to vector<64x64xi32>
    %124 = arith.sitofp %123 : vector<64x64xi32> to vector<64x64xf32>
    %cst_47 = arith.constant dense<0.000000e+00> : vector<64x8xf32>
    %125 = tpu.matmul %124, %120, %cst_47 {dimension_numbers = #tpu.dot_dimension_numbers<[1], [0], [0], [1], [0, 0, 1, 1], [], []>} : vector<64x64xf32>, vector<64x8xf32>, vector<64x8xf32> -> vector<64x8xf32>
    %126 = arith.addf %114, %125 : vector<64x8xf32>
    %127 = vector.broadcast %49 : vector<64x1xi32> to vector<64x64xi32>
    %128 = arith.cmpi eq, %127, %118 : vector<64x64xi32>
    %129 = arith.extui %128 : vector<64x64xi1> to vector<64x64xi32>
    %130 = arith.sitofp %129 : vector<64x64xi32> to vector<64x64xf32>
    %cst_48 = arith.constant dense<0.000000e+00> : vector<64x8xf32>
    %131 = tpu.matmul %130, %120, %cst_48 {dimension_numbers = #tpu.dot_dimension_numbers<[1], [0], [0], [1], [0, 0, 1, 1], [], []>} : vector<64x64xf32>, vector<64x8xf32>, vector<64x8xf32> -> vector<64x8xf32>
    %132 = arith.addf %115, %131 : vector<64x8xf32>
    %133 = tpu.concatenate %3, %126, %132 in 1 : vector<64x8xf32>, vector<64x8xf32>, vector<64x8xf32> -> vector<64x24xf32>
    %134 = vector.extract_strided_slice %133 {offsets = [0, 8], sizes = [64, 8], strides = [1, 1]} : vector<64x24xf32> to vector<64x8xf32>
    %135 = vector.extract_strided_slice %133 {offsets = [0, 16], sizes = [64, 8], strides = [1, 1]} : vector<64x24xf32> to vector<64x8xf32>
    %136 = arith.subf %134, %135 : vector<64x8xf32>
    %137 = arith.mulf %136, %136 : vector<64x8xf32>
    %cst_49 = arith.constant dense<0.000000e+00> : vector<64xf32>
    %138 = vector.multi_reduction <add>, %137, %cst_49 [1] : vector<64x8xf32> to vector<64xf32>
    %139 = vector.shape_cast %138 : vector<64xf32> to vector<64x1xf32>
    %140 = tpu.concatenate %31, %43, %139 in 1 : vector<64x1xf32>, vector<64x1xf32>, vector<64x1xf32> -> vector<64x3xf32>
    %cst_50 = arith.constant 0.000000e+00 : f32
    %141 = vector.broadcast %cst_50 : f32 to vector<64x5xf32>
    %142 = tpu.concatenate %133, %140, %141 in 1 : vector<64x24xf32>, vector<64x3xf32>, vector<64x5xf32> -> vector<64x32xf32>
    %c0_51 = arith.constant 0 : index
    %c0_52 = arith.constant 0 : index
    %c0_53 = arith.constant 0 : index
    %143 = vector.load %arg7[%c0_51, %c0_52, %c0_53] : memref<1x64x32xf32, #tpu.memory_space<vmem>>, vector<1x64x32xf32>
    %144 = vector.shape_cast %143 : vector<1x64x32xf32> to vector<64x32xf32>
    %145 = vector.shape_cast %142 : vector<64x32xf32> to vector<1x64x32xf32>
    tpu.vector_store %arg7[%c0_51, %c0_52, %c0_53], %145 {strides = array<i32>} : memref<1x64x32xf32, #tpu.memory_space<vmem>>, vector<1x64x32xf32>,
    return
  }
  func.func @transform_0(%arg0: i32, %arg1: i32) -> (i32, i32, i32) {
    %c0_i32 = arith.constant 0 : i32
    %c0_i32_0 = arith.constant 0 : i32
    return %arg0, %arg1, %c0_i32 : i32, i32, i32
  }
  func.func @transform_1(%arg0: i32, %arg1: i32) -> (i32, i32, i32) {
    %c0_i32 = arith.constant 0 : i32
    %c0_i32_0 = arith.constant 0 : i32
    %c0_i32_1 = arith.constant 0 : i32
    return %arg0, %c0_i32, %c0_i32_0 : i32, i32, i32
  }
  func.func @transform_2(%arg0: i32, %arg1: i32) -> (i32, i32, i32) {
    %c0_i32 = arith.constant 0 : i32
    %c0_i32_0 = arith.constant 0 : i32
    %c0_i32_1 = arith.constant 0 : i32
    return %arg0, %c0_i32, %c0_i32_0 : i32, i32, i32
  }
  func.func @transform_3(%arg0: i32, %arg1: i32) -> (i32, i32, i32) {
    %c0_i32 = arith.constant 0 : i32
    %c0_i32_0 = arith.constant 0 : i32
    %c0_i32_1 = arith.constant 0 : i32
    return %arg0, %c0_i32, %c0_i32_0 : i32, i32, i32
  }
  func.func @transform_4(%arg0: i32, %arg1: i32) -> (i32, i32, i32) {
    %c0_i32 = arith.constant 0 : i32
    %c0_i32_0 = arith.constant 0 : i32
    return %arg0, %arg1, %c0_i32 : i32, i32, i32
  }
  func.func @transform_5(%arg0: i32, %arg1: i32) -> (i32, i32, i32) {
    %c0_i32 = arith.constant 0 : i32
    %c0_i32_0 = arith.constant 0 : i32
    return %arg0, %arg1, %c0_i32 : i32, i32, i32
  }
}

</mosaic_0001>

<bundles_post_ra>
// kernel: tpu_custom_call.1
= control target key start
LH: loop header
LB: loop body
LE: loop exit
PB: predicated region body
PF: predicated region fallthrough
CT: control target
= control target key end

     0   :  { %s2886_s18 = smov 0   ;;  %s2888_s19 = smov 0   ;;  %s4421_s0 = inlined_call_operand.vmem [shape: f32[2,64,8], index: 0, kind: input, shape index: {}]   ;;  %s4422_s1 = inlined_call_operand.vmem [shape: f32[2,8,64], index: 1, kind: input, shape index: {}]   ;;  %s4423_s2 = inlined_call_operand.vmem [shape: f32[2,1,64], index: 2, kind: input, shape index: {}]   ;;  %s4424_s3 = inlined_call_operand.vmem [shape: f32[2,64,8], index: 3, kind: input, shape index: {}]   ;;  %s4425_s4 = inlined_call_operand.vmem [shape: s32[2,64,8], index: 4, kind: output, shape index: {0}]   ;;  %s4426_s5 = inlined_call_operand.vmem [shape: f32[2,64,32], index: 5, kind: output, shape index: {1}]  }
   0x1   :  { %s2890_s20 = smov 0  }
   0x2 LB: > { %s28_s21 = sadd.s32 1, %s2845_s19  ;;  %p2622_p0 = scmp.ge.s32.totalorder %s2849_s20, 1  ;;  %s2849_s20 = sphi %s2890_s20, %s16_s20   ;;  %s2845_s19 = sphi %s2888_s19, %s4458_s19   ;;  %s2841_s18 = sphi %s2886_s18, %s4457_s18  }
   0x3   : > { %p30_p1 = scmp.ge.s32.totalorder %s28_s21, 2  ;;  %p240_p2 = scmp.lt.s32.totalorder %s2849_s20, 3 }
   0x5   : > { %s4460_s21 = smov (%p30_p1, %s28_s21), 0  ;;  %p241_p3 = pnand %p2622_p0, %p240_p2 }
   0x7   : > { %244 = sbr.rel (%p241_p3) target bundleno = 3318 (0xcf6), region = 36 }
   0xc   : > { %p298_p4 = scmp.lt.s32.totalorder %s2841_s18, 1  ;;  %vm356_vm0 = vcmask 64512   ;;  %v550_v27 = vlaneseq  ;;  %vm586_vm2 = vcmask 523264   ;;  %s2852_s11 = smov 8  }
   0xd   : > { %s2853_s12 = smov 16   ;;  %s2854_s13 = smov 120  }
   0xe   : > { %s4462_s18 = smov (!%p298_p4, %s2841_s18), 1  ;;  %v2947_v31 = vshrl.u32 %v550_v27, 7  ;;  %v2949_v34 = vand.u32 127, %v550_v27  ;;  %s2855_s14 = smov 24  }
   0xf   : > { %s2907_s22 = sshll.u32 %s4462_s18, 6  ;;  %s2625_s23 = sshll.u32 %s4462_s18, 3 }
  0x10   : > { %s2914_s26 = scalar_lea.vmem %s4421_s0, %s2907_s22  ;;  %s310_s29 = scalar_lea.vmem %s4422_s1, %s2625_s23  ;;  %v2952_v35 = vadd.s32 8, %v2947_v31  ;;  %v2957_v45 = vadd.s32 24, %v2947_v31  ;;  %vm570_vm3 = vcmp.eq.s32.totalorder %v2949_v34, %v2947_v31  ;;  %v2962_v52 = vadd.s32 16, %v2947_v31 }
  0x11   : > { %v381_v0 = vld [vmem:[%s310_s29] sm:$0xff]  ;;  %v341_v2 = vld [vmem:[%s2914_s26 + $0x8] sm:$0xff]  ;;  %v342_v3 = vld [vmem:[%s2914_s26 + $0x10] sm:$0xff]  ;;  %s313_s7 = scalar_lea.vmem %s4423_s2, %s4462_s18  ;;  %v2971_v61 = vadd.s32 40, %v2947_v31  ;;  %s3129_s10 = scalar_lea.vmem %s4424_s3, %s2907_s22 }
  0x12   : > { %v340_v1 = vld [vmem:[%s2914_s26] sm:$0xff]  ;;  %2720 = vmatprep.subr.mxu0 %v381_v0  ;;  %v343_v4 = vld [vmem:[%s2914_s26 + $0x18] sm:$0xff]  ;;  %v349_v6 = vmul.f32 %v341_v2, %v341_v2  ;;  %v350_v7 = vmul.f32 %v342_v3, %v342_v3  ;;  %v345_v12 = vld [vmem:[%s2914_s26 + $0x28] sm:$0xff]  ;;  %vm571_vm1 = vcmp.eq.s32.totalorder %v2949_v34, %v2952_v35  ;;  %vm573_vm4 = vcmp.eq.s32.totalorder %v2949_v34, %v2957_v45  ;;  %s4265_s17 = scalar_lea.vmem %s4426_s5, %s2907_s22  ;;  %s4364_s24 = scalar_lea.vmem %s4425_s4, %s2907_s22 }
  0x13   : > { %2722 = vmatprep.mubr.msk.f32.mxu0 %vm356_vm0, %v340_v1  ;;  %v348_v5 = vmul.f32 %v340_v1, %v340_v1  ;;  %2721 = vmatpush3.msra.mxu0 %v381_v0  ;;  %v351_v8 = vmul.f32 %v343_v4, %v343_v4  ;;  %v344_v10 = vld [vmem:[%s2914_s26 + $0x20] sm:$0xff]  ;;  %v353_v16 = vmul.f32 %v345_v12, %v345_v12  ;;  %v346_v17 = vld [vmem:[%s2914_s26 + $0x30] sm:$0xff]  ;;  %v347_v18 = vld [vmem:[%s2914_s26 + $0x38] sm:$0xff] }
  0x14   : > { %2723 = vmatmul.mubr.msk.f32.vlgmr.msra.gmra.mxu0 %vm356_vm0, %v341_v2  ;;  %v363_v11 = vsel %vm356_vm0, %v350_v7, 0.0  ;;  %v360_v13 = vsel %vm356_vm0, %v349_v6, 0.0  ;;  %v352_v14 = vmul.f32 %v344_v10, %v344_v10  ;;  %v354_v20 = vmul.f32 %v346_v17, %v346_v17  ;;  %v2640_v29 = vld [vmem:[%s313_s7] ss:$0 sm:$0xff] }
  0x15   : > { %v357_v9 = vsel %vm356_vm0, %v348_v5, 0.0  ;;  %2725 = vmatprep.mubr.msk.f32.mxu0 %vm356_vm0, %v342_v3  ;;  %364 = vadd.xlane.f32.xlu1 %v363_v11  ;;  %v366_v15 = vsel %vm356_vm0, %v351_v8, 0.0  ;;  %v372_v21 = vsel %vm356_vm0, %v353_v16, 0.0  ;;  %v355_v22 = vmul.f32 %v347_v18, %v347_v18 }
  0x16   : > { %358 = vadd.xlane.f32.xlu0 %v357_v9  ;;  %v369_v19 = vsel %vm356_vm0, %v352_v14, 0.0  ;;  %v375_v23 = vsel %vm356_vm0, %v354_v20, 0.0  ;;  %vm572_vm5 = vcmp.eq.s32.totalorder %v2949_v34, %v2962_v52  ;;  %v2983_v6 = vadd.s32 32, %v2947_v31 }
  0x17   : > { %v378_v24 = vsel %vm356_vm0, %v355_v22, 0.0  ;;  %vm575_vm6 = vcmp.eq.s32.totalorder %v2949_v34, %v2971_v61  ;;  %v2995_v14 = vadd.s32 56, %v2947_v31 }
  0x18   : > { %2726 = vmatmul.mubr.msk.f32.gmra.mxu0 %vm356_vm0, %v343_v4  ;;  %vm574_vm7 = vcmp.eq.s32.totalorder %v2949_v34, %v2983_v6 }
  0x19   : > { %2728 = vmatprep.mubr.msk.f32.mxu0 %vm356_vm0, %v344_v10  ;;  %367 = vadd.xlane.f32.xlu1 %v366_v15  ;;  %vm577_vm8 = vcmp.eq.s32.totalorder %v2949_v34, %v2995_v14 }
  0x1a   : > { %361 = vadd.xlane.f32.xlu0 %v360_v13 }
  0x1c   : > { %2729 = vmatmul.mubr.msk.f32.gmra.mxu0 %vm356_vm0, %v345_v12 }
  0x1d   : > { %2731 = vmatprep.mubr.msk.f32.mxu0 %vm356_vm0, %v346_v17  ;;  %373 = vadd.xlane.f32.xlu1 %v372_v21  ;;  %v3007_v21 = vadd.s32 48, %v2947_v31 }
  0x1e   : > { %370 = vadd.xlane.f32.xlu0 %v369_v19 }
  0x1f   : > { %vm576_vm9 = vcmp.eq.s32.totalorder %v2949_v34, %v3007_v21 }
  0x20   : > { %2732 = vmatmul.mubr.msk.f32.gmra.mxu0 %vm356_vm0, %v347_v18 }
  0x21   : > { %379 = vadd.xlane.f32.xlu1 %v378_v24 }
  0x22   : > { %376 = vadd.xlane.f32.xlu0 %v375_v23 }
  0x9e   : > { %v365_v25 = vpop.xlane.xlu1 %364 }
  0x9f   : > { %v359_v26 = vpop.xlane.xlu0 %358  ;;  %v520_v46 = vadd.f32 %v2640_v29, %v365_v25 }
  0xa0   : > { %v518_v36 = vadd.f32 %v2640_v29, %v359_v26 }
  0xa2   : > { %v368_v28 = vpop.xlane.xlu1 %367 }
  0xa3   : > { %v362_v30 = vpop.xlane.xlu0 %361  ;;  %v521_v42 = vadd.f32 %v2640_v29, %v368_v28 }
  0xa4   : > { %v519_v32 = vadd.f32 %v2640_v29, %v362_v30 }
  0xa6   : > { %v374_v38 = vpop.xlane.xlu1 %373 }
  0xa7   : > { %v371_v43 = vpop.xlane.xlu0 %370  ;;  %v523_v51 = vadd.f32 %v2640_v29, %v374_v38 }
  0xa8   : > { %v522_v60 = vadd.f32 %v2640_v29, %v371_v43 }
  0xaa   : > { %v380_v57 = vpop.xlane.xlu1 %379 }
  0xab   : > { %v377_v2 = vpop.xlane.xlu0 %376  ;;  %v525_v5 = vadd.f32 %v2640_v29, %v380_v57 }
  0xac   : > { %v524_v13 = vadd.f32 %v2640_v29, %v377_v2 }
  0xd4   : > { %v2724_v33 = vpop.f32.mrf.mxu0 }
  0xd5   : > { %v527_v37 = vmul.f32 2.0, %v2724_v33 }
  0xd6   : > { %v472_v39 = vpop.f32.mrf.mxu0 }
  0xd7   : > { %v535_v40 = vsub.f32 %v519_v32, %v527_v37  ;;  %v526_v41 = vmul.f32 2.0, %v472_v39 }
  0xd8   : > { %v2727_v44 = vpop.f32.mrf.mxu0 }
  0xd9   : > { %v543_v47 = vmax.f32 %v535_v40, 0.0  ;;  %v534_v48 = vsub.f32 %v518_v36, %v526_v41  ;;  %v529_v49 = vmul.f32 2.0, %v2727_v44 }
  0xda   : > { %v482_v50 = vpop.f32.mrf.mxu0 }
  0xdb   : > { %v542_v53 = vmax.f32 %v534_v48, 0.0  ;;  %v537_v54 = vsub.f32 %v521_v42, %v529_v49  ;;  %v528_v55 = vmul.f32 2.0, %v482_v50  ;;  %v2964_v56 = vsel %vm571_vm1, 3e+38, %v543_v47 }
  0xdc   : > { %v2730_v58 = vpop.f32.mrf.mxu0  ;;  %v590_v59 = vsel %vm586_vm2, %v2964_v56, inf }
  0xdd   : > { %v545_v62 = vmax.f32 %v537_v54, 0.0  ;;  %v536_v63 = vsub.f32 %v520_v46, %v528_v55  ;;  %v531_v0 = vmul.f32 2.0, %v2730_v58  ;;  %591 = vmin.xlane.f32.xlu1 %v590_v59  ;;  %v2976_v1 = vsel %vm570_vm3, 3e+38, %v542_v53 }
  0xde   : > { %v492_v3 = vpop.f32.mrf.mxu0  ;;  %v587_v4 = vsel %vm586_vm2, %v2976_v1, inf }
  0xdf   : > { %v544_v7 = vmax.f32 %v536_v63, 0.0  ;;  %v539_v8 = vsub.f32 %v523_v51, %v531_v0  ;;  %v530_v9 = vmul.f32 2.0, %v492_v3  ;;  %588 = vmin.xlane.f32.xlu0 %v587_v4  ;;  %v2988_v10 = vsel %vm573_vm4, 3e+38, %v545_v62 }
  0xe0   : > { %v2733_v11 = vpop.f32.mrf.mxu0  ;;  %v596_v12 = vsel %vm586_vm2, %v2988_v10, inf }
  0xe1   : > { %v547_v15 = vmax.f32 %v539_v8, 0.0  ;;  %v538_v16 = vsub.f32 %v522_v60, %v530_v9  ;;  %v533_v17 = vmul.f32 2.0, %v2733_v11  ;;  %597 = vmin.xlane.f32.xlu1 %v596_v12  ;;  %v3000_v18 = vsel %vm572_vm5, 3e+38, %v544_v7 }
  0xe2   : > { %v502_v19 = vpop.f32.mrf.mxu0  ;;  %v593_v20 = vsel %vm586_vm2, %v3000_v18, inf }
  0xe3   : > { %v546_v22 = vmax.f32 %v538_v16, 0.0  ;;  %v541_v23 = vsub.f32 %v525_v5, %v533_v17  ;;  %v532_v24 = vmul.f32 2.0, %v502_v19  ;;  %594 = vmin.xlane.f32.xlu0 %v593_v20  ;;  %v3009_v25 = vsel %vm575_vm6, 3e+38, %v547_v15 }
  0xe4   : > { %v602_v26 = vsel %vm586_vm2, %v3009_v25, inf }
  0xe5   : > { %v549_v27 = vmax.f32 %v541_v23, 0.0  ;;  %v540_v28 = vsub.f32 %v524_v13, %v532_v24  ;;  %603 = vmin.xlane.f32.xlu1 %v602_v26  ;;  %v3015_v29 = vsel %vm574_vm7, 3e+38, %v546_v22  ;;  %v1881_v26 = vld [vmem:[%s3129_s10 + $0x38] sm:$0xff] }
  0xe6   : > { %v599_v30 = vsel %vm586_vm2, %v3015_v29, inf  ;;  %2734 = vmatprep.subr.mxu1 %v1881_v26  ;;  %2762 = vmatprep.subr.mxu0 %v1881_v26 }
  0xe7   : > { %v548_v32 = vmax.f32 %v540_v28, 0.0  ;;  %600 = vmin.xlane.f32.xlu0 %v599_v30  ;;  %v3021_v33 = vsel %vm577_vm8, 3e+38, %v549_v27  ;;  %v1880_v27 = vld [vmem:[%s3129_s10 + $0x30] sm:$0xff]  ;;  %2735 = vmatpush3.msra.mxu1 %v1881_v26  ;;  %v1879_v28 = vld [vmem:[%s3129_s10 + $0x28] sm:$0xff]  ;;  %v1878_v30 = vld [vmem:[%s3129_s10 + $0x20] sm:$0xff] }
  0xe8   : > { %v608_v36 = vsel %vm586_vm2, %v3021_v33, inf  ;;  %2763 = vmatpush3.msra.mxu0 %v1881_v26  ;;  %2736 = vmatprep.subr.mxu1 %v1880_v27  ;;  %v1877_v26 = vld [vmem:[%s3129_s10 + $0x18] sm:$0xff] }
  0xe9   : > { %609 = vmin.xlane.f32.xlu1 %v608_v36  ;;  %v3025_v37 = vsel %vm576_vm9, 3e+38, %v548_v32  ;;  %2764 = vmatprep.subr.mxu0 %v1880_v27 }
  0xea   : > { %v605_v38 = vsel %vm586_vm2, %v3025_v37, inf  ;;  %2737 = vmatpush3.msra.mxu1 %v1880_v27  ;;  %2765 = vmatpush3.msra.mxu0 %v1880_v27  ;;  %v1875_v27 = vld [vmem:[%s3129_s10 + $0x8] sm:$0xff] }
  0xeb   : > { %606 = vmin.xlane.f32.xlu0 %v605_v38  ;;  %2738 = vmatprep.subr.mxu1 %v1879_v28 }
  0xec   : > { %2766 = vmatprep.subr.mxu0 %v1879_v28  ;;  %2739 = vmatpush3.msra.mxu1 %v1879_v28 }
  0xed   : > { %2767 = vmatpush3.msra.mxu0 %v1879_v28  ;;  %2740 = vmatprep.subr.mxu1 %v1878_v30 }
  0xee   : > { %2768 = vmatprep.subr.mxu0 %v1878_v30  ;;  %2741 = vmatpush3.msra.mxu1 %v1878_v30 }
  0xef   : > { %2769 = vmatpush3.msra.mxu0 %v1878_v30  ;;  %2742 = vmatprep.subr.mxu1 %v1877_v26 }
  0xf0   : > { %2743 = vmatpush3.msra.mxu1 %v1877_v26  ;;  %2770 = vmatprep.subr.mxu0 %v1877_v26 }
  0xf1   : > { %2771 = vmatpush3.msra.mxu0 %v1877_v26 }
 0x166   : > { %v3029_v39 = vpop.xlane.xlu1 %591 }
 0x167   : > { %vm612_vm10 = vcmp.eq.f32.partialorder %v2964_v56, %v3029_v39 }
 0x168   : > { %v3033_v40 = vpop.xlane.xlu0 %588  ;;  %v620_v41 = vsel %vm612_vm10, %v2949_v34, 64 }
 0x169   : > { %vm611_vm11 = vcmp.eq.f32.partialorder %v2976_v1, %v3033_v40  ;;  %v3039_v42 = vsel %vm586_vm2, %v620_v41, 2147483647 }
 0x16a   : > { %v3041_v43 = vpop.xlane.xlu1 %597  ;;  %v644_v44 = vshra.s32 %v3039_v42, 16  ;;  %v619_v46 = vsel %vm611_vm11, %v2949_v34, 64  ;;  %v643_v32 = vand.u32 65535, %v3039_v42 }
 0x16b   : > { %4438 = vst [vmem:[#allocation2_spill] sm:$0xff] %v3041_v43  ;;  %vm614_vm12 = vcmp.eq.f32.partialorder %v2988_v10, %v3041_v43  ;;  %v3048_v47 = vsel %vm586_vm2, %v619_v46, 2147483647 }
 0x16c   : > { %v3050_v48 = vpop.xlane.xlu0 %594  ;;  %v3052_v49 = vcvt.s32.f32 %v644_v44  ;;  %v629_v50 = vshra.s32 %v3048_v47, 16  ;;  %v622_v51 = vsel %vm614_vm12, %v2949_v34, 64  ;;  %v628_v36 = vand.u32 65535, %v3048_v47 }
 0x16d   : > { %vm613_vm13 = vcmp.eq.f32.partialorder %v3000_v18, %v3050_v48  ;;  %v3059_v53 = vsel %vm586_vm2, %v622_v51, 2147483647  ;;  %v645_v41 = vcvt.s32.f32 %v643_v32 }
 0x16e   : > { %647 = vmin.xlane.f32.xlu1 %v3052_v49  ;;  %v3062_v54 = vpop.xlane.xlu1 %603  ;;  %v3064_v55 = vcvt.s32.f32 %v629_v50  ;;  %v674_v57 = vshra.s32 %v3059_v53, 16  ;;  %v621_v58 = vsel %vm613_vm13, %v2949_v34, 64  ;;  %v673_v44 = vand.u32 65535, %v3059_v53 }
 0x16f   : > { %4439 = vst [vmem:[#allocation3_spill] sm:$0xff] %v3062_v54  ;;  %vm616_vm14 = vcmp.eq.f32.partialorder %v3009_v25, %v3062_v54  ;;  %v3071_v59 = vsel %vm586_vm2, %v621_v58, 2147483647  ;;  %v630_v51 = vcvt.s32.f32 %v628_v36 }
 0x170   : > { %632 = vmin.xlane.f32.xlu0 %v3064_v55  ;;  %v3074_v60 = vpop.xlane.xlu0 %600  ;;  %v3076_v62 = vcvt.s32.f32 %v674_v57  ;;  %v659_v63 = vshra.s32 %v3071_v59, 16  ;;  %v624_v0 = vsel %vm616_vm14, %v2949_v34, 64  ;;  %v658_v57 = vand.u32 65535, %v3071_v59 }
 0x171   : > { %4440 = vst [vmem:[#allocation4_spill] sm:$0xff] %v3074_v60  ;;  %vm615_vm15 = vcmp.eq.f32.partialorder %v3015_v29, %v3074_v60  ;;  %v3083_v2 = vsel %vm586_vm2, %v624_v0, 2147483647  ;;  %v675_v58 = vcvt.s32.f32 %v673_v44 }
 0x172   : > { %677 = vmin.xlane.f32.xlu1 %v3076_v62  ;;  %v3086_v3 = vpop.xlane.xlu1 %609  ;;  %v3088_v4 = vcvt.s32.f32 %v659_v63  ;;  %v704_v5 = vshra.s32 %v3083_v2, 16  ;;  %v623_v7 = vsel %vm615_vm15, %v2949_v34, 64  ;;  %v703_v63 = vand.u32 65535, %v3083_v2 }
 0x173   : > { %4441 = vst [vmem:[#allocation5_spill] sm:$0xff] %v3086_v3  ;;  %vm618_vm1 = vcmp.eq.f32.partialorder %v3021_v33, %v3086_v3  ;;  %v3095_v8 = vsel %vm586_vm2, %v623_v7, 2147483647  ;;  %v660_v0 = vcvt.s32.f32 %v658_v57 }
 0x174   : > { %662 = vmin.xlane.f32.xlu0 %v3088_v4  ;;  %v3098_v9 = vpop.xlane.xlu0 %606  ;;  %v3100_v11 = vcvt.s32.f32 %v704_v5  ;;  %v689_v12 = vshra.s32 %v3095_v8, 16  ;;  %v626_v13 = vsel %vm618_vm1, %v2949_v34, 64  ;;  %v688_v59 = vand.u32 65535, %v3095_v8 }
 0x175   : > { %4442 = vst [vmem:[#allocation6_spill] sm:$0xff] %v3098_v9  ;;  %vm617_vm3 = vcmp.eq.f32.partialorder %v3025_v37, %v3098_v9  ;;  %v3107_v15 = vsel %vm586_vm2, %v626_v13, 2147483647  ;;  %v705_v7 = vcvt.s32.f32 %v703_v63 }
 0x176   : > { %707 = vmin.xlane.f32.xlu1 %v3100_v11  ;;  %v3110_v16 = vcvt.s32.f32 %v689_v12  ;;  %v734_v17 = vshra.s32 %v3107_v15, 16  ;;  %v625_v19 = vsel %vm617_vm3, %v2949_v34, 64  ;;  %v733_v2 = vand.u32 65535, %v3107_v15 }
 0x177   : > { %v3115_v20 = vsel %vm586_vm2, %v625_v19, 2147483647  ;;  %v690_v13 = vcvt.s32.f32 %v688_v59 }
 0x178   : > { %692 = vmin.xlane.f32.xlu0 %v3110_v16  ;;  %v3118_v22 = vcvt.s32.f32 %v734_v17  ;;  %v719_v23 = vshra.s32 %v3115_v20, 16  ;;  %v718_v8 = vand.u32 65535, %v3115_v20  ;;  %v735_v15 = vcvt.s32.f32 %v733_v2  ;;  %v1876_v20 = vld [vmem:[%s3129_s10 + $0x10] sm:$0xff] }
 0x179   : > { %2744 = vmatprep.subr.mxu1 %v1876_v20  ;;  %2772 = vmatprep.subr.mxu0 %v1876_v20 }
 0x17a   : > { %737 = vmin.xlane.f32.xlu1 %v3118_v22  ;;  %v3122_v24 = vcvt.s32.f32 %v719_v23  ;;  %v720_v23 = vcvt.s32.f32 %v718_v8  ;;  %2745 = vmatpush3.msra.mxu1 %v1876_v20  ;;  %v4427_v8 = vmov 0.0  }
 0x17b   : > { %2746 = vmatprep.subr.mxu1 %v1875_v27  ;;  %2773 = vmatpush3.msra.mxu0 %v1876_v20 }
 0x17c   : > { %722 = vmin.xlane.f32.xlu0 %v3122_v24  ;;  %2747 = vmatpush3.msra.mxu1 %v1875_v27 }
 0x17d   : > { %2774 = vmatprep.subr.mxu0 %v1875_v27 }
 0x17e   : > { %2775 = vmatpush3.msra.mxu0 %v1875_v27 }
 0x1f7   : > { %v3137_v38 = vpop.xlane.xlu1 %647 }
 0x1f8   : > { %vm649_vm4 = vcmp.eq.f32.partialorder %v3052_v49, %v3137_v38 }
 0x1f9   : > { %v3142_v46 = vpop.xlane.xlu0 %632  ;;  %v650_v50 = vsel %vm649_vm4, %v645_v41, inf }
 0x1fa   : > { %651 = vmin.xlane.f32.xlu1 %v650_v50  ;;  %vm634_vm5 = vcmp.eq.f32.partialorder %v3064_v55, %v3142_v46  ;;  %v639_v28 = vcvt.f32.s32 %v3142_v46 }
 0x1fb   : > { %v3147_v42 = vpop.xlane.xlu1 %677  ;;  %v635_v47 = vsel %vm634_vm5, %v630_v51, inf }
 0x1fc   : > { %636 = vmin.xlane.f32.xlu0 %v635_v47  ;;  %vm679_vm6 = vcmp.eq.f32.partialorder %v3076_v62, %v3147_v42  ;;  %v684_v36 = vcvt.f32.s32 %v3147_v42  ;;  %v640_v51 = vshll.u32 %v639_v28, 16 }
 0x1fd   : > { %v3152_v49 = vpop.xlane.xlu0 %662  ;;  %v680_v53 = vsel %vm679_vm6, %v675_v58, inf }
 0x1fe   : > { %681 = vmin.xlane.f32.xlu1 %v680_v53  ;;  %vm664_vm7 = vcmp.eq.f32.partialorder %v3088_v4, %v3152_v49  ;;  %v669_v44 = vcvt.f32.s32 %v3152_v49  ;;  %v685_v53 = vshll.u32 %v684_v36, 16 }
 0x1ff   : > { %v3157_v55 = vpop.xlane.xlu1 %707  ;;  %v665_v5 = vsel %vm664_vm7, %v660_v0, inf }
 0x200   : > { %666 = vmin.xlane.f32.xlu0 %v665_v5  ;;  %vm709_vm8 = vcmp.eq.f32.partialorder %v3100_v11, %v3157_v55  ;;  %v714_v58 = vcvt.f32.s32 %v3157_v55  ;;  %v670_v46 = vshll.u32 %v669_v44, 16 }
 0x201   : > { %v3162_v62 = vpop.xlane.xlu0 %692  ;;  %v710_v12 = vsel %vm709_vm8, %v705_v7, inf }
 0x202   : > { %711 = vmin.xlane.f32.xlu1 %v710_v12  ;;  %vm694_vm9 = vcmp.eq.f32.partialorder %v3110_v16, %v3162_v62  ;;  %v699_v42 = vcvt.f32.s32 %v3162_v62  ;;  %v715_v2 = vshll.u32 %v714_v58, 16 }
 0x203   : > { %v3167_v4 = vpop.xlane.xlu1 %737  ;;  %v695_v17 = vsel %vm694_vm9, %v690_v13, inf }
 0x204   : > { %696 = vmin.xlane.f32.xlu0 %v695_v17  ;;  %vm739_vm10 = vcmp.eq.f32.partialorder %v3118_v22, %v3167_v4  ;;  %v1874_v22 = vld [vmem:[%s3129_s10] sm:$0xff] }
 0x205   : > { %v3171_v11 = vpop.xlane.xlu0 %722  ;;  %v740_v19 = vsel %vm739_vm10, %v735_v15, inf  ;;  %2748 = vmatprep.subr.mxu1 %v1874_v22  ;;  %2776 = vmatprep.subr.mxu0 %v1874_v22 }
 0x206   : > { %741 = vmin.xlane.f32.xlu1 %v740_v19  ;;  %vm724_vm11 = vcmp.eq.f32.partialorder %v3122_v24, %v3171_v11  ;;  %2749 = vmatpush3.msra.mxu1 %v1874_v22  ;;  %v654_v24 = vcvt.f32.s32 %v3137_v38  ;;  %v729_v15 = vcvt.f32.s32 %v3171_v11 }
 0x207   : > { %v725_v16 = vsel %vm724_vm11, %v720_v23, inf  ;;  %2777 = vmatpush3.msra.mxu0 %v1874_v22 }
 0x208   : > { %726 = vmin.xlane.f32.xlu0 %v725_v16  ;;  %v655_v32 = vshll.u32 %v654_v24, 16 }
 0x283   : > { %v652_v30 = vpop.xlane.xlu1 %651 }
 0x284   : > { %v653_v41 = vcvt.f32.s32 %v652_v30 }
 0x285   : > { %v637_v50 = vpop.xlane.xlu0 %636 }
 0x286   : > { %v3183_v57 = vadd.s32 %v655_v32, %v653_v41  ;;  %v638_v47 = vcvt.f32.s32 %v637_v50  ;;  %v730_v32 = vshll.u32 %v729_v15, 16 }
 0x287   : > { %v682_v63 = vpop.xlane.xlu1 %681 }
 0x288   : > { %v3186_v0 = vadd.s32 %v640_v51, %v638_v47  ;;  %v683_v38 = vcvt.f32.s32 %v682_v63  ;;  %vm748_vm12 = vcmp.eq.s32.totalorder %v2949_v34, %v3183_v57  ;;  %vm1883_vm13 = vcmp.eq.s32.totalorder %v3183_v57, %v2949_v34 }
 0x289   : > { %v667_v59 = vpop.xlane.xlu0 %666  ;;  %v3192_v49 = vsel %vm748_vm12, 3e+38, %v2964_v56  ;;  %v744_v56 = vcvt.f32.s32 %v3167_v4  ;;  %v2642_v19 = vsel %vm1883_vm13, 1.0, %v4427_v8  ;;  %v700_v4 = vshll.u32 %v699_v42, 16 }
 0x28a   : > { %v3194_v5 = vadd.s32 %v685_v53, %v683_v38  ;;  %v668_v7 = vcvt.f32.s32 %v667_v59  ;;  %v766_v55 = vsel %vm586_vm2, %v3192_v49, inf  ;;  %vm1882_vm14 = vcmp.eq.s32.totalorder %v3186_v0, %v2949_v34 }
 0x28b   : > { %767 = vmin.xlane.f32.xlu1 %v766_v55  ;;  %v712_v12 = vpop.xlane.xlu1 %711  ;;  %vm747_vm15 = vcmp.eq.s32.totalorder %v2949_v34, %v3186_v0  ;;  %v2641_v17 = vsel %vm1882_vm14, 1.0, %v4427_v8 }
 0x28c   : > { %v3205_v62 = vadd.s32 %v670_v46, %v668_v7  ;;  %v713_v13 = vcvt.f32.s32 %v712_v12  ;;  %2750 = vmatprep.mubr.msk.f32.mxu1 %vm586_vm2, %v2641_v17  ;;  %v3212_v23 = vsel %vm747_vm15, 3e+38, %v2976_v1  ;;  %vm750_vm1 = vcmp.eq.s32.totalorder %v2949_v34, %v3194_v5 }
 0x28d   : > { %v697_v26 = vpop.xlane.xlu0 %696  ;;  %2751 = vmatmul.mubr.msk.f32.vlgmr.msra.gmra.mxu1 %vm586_vm2, %v2642_v19  ;;  %v763_v20 = vsel %vm586_vm2, %v3212_v23, inf  ;;  %v3222_v27 = vsel %vm750_vm1, 3e+38, %v2988_v10  ;;  %vm1885_vm4 = vcmp.eq.s32.totalorder %v3194_v5, %v2949_v34  ;;  %v745_v1 = vshll.u32 %v744_v56, 16 }
 0x28e   : > { %v3216_v16 = vadd.s32 %v715_v2, %v713_v13  ;;  %v698_v11 = vcvt.f32.s32 %v697_v26  ;;  %764 = vmin.xlane.f32.xlu0 %v763_v20  ;;  %vm1884_vm3 = vcmp.eq.s32.totalorder %v3205_v62, %v2949_v34  ;;  %vm749_vm5 = vcmp.eq.s32.totalorder %v2949_v34, %v3205_v62 }
 0x28f   : > { %v742_v22 = vpop.xlane.xlu1 %741  ;;  %v772_v28 = vsel %vm586_vm2, %v3222_v27, inf  ;;  %v2643_v10 = vsel %vm1884_vm3, 1.0, %v4427_v8  ;;  %v3236_v36 = vsel %vm749_vm5, 3e+38, %v3000_v18  ;;  %v2644_v50 = vsel %vm1885_vm4, 1.0, %v4427_v8 }
 0x290   : > { %v3230_v24 = vadd.s32 %v700_v4, %v698_v11  ;;  %v743_v30 = vcvt.f32.s32 %v742_v22  ;;  %773 = vmin.xlane.f32.xlu1 %v772_v28  ;;  %vm752_vm6 = vcmp.eq.s32.totalorder %v2949_v34, %v3216_v16  ;;  %2753 = vmatprep.mubr.msk.f32.mxu1 %vm586_vm2, %v2643_v10  ;;  %v769_v51 = vsel %vm586_vm2, %v3236_v36, inf }
 0x291   : > { %v727_v41 = vpop.xlane.xlu0 %726  ;;  %2754 = vmatmul.mubr.msk.f32.gmra.mxu1 %vm586_vm2, %v2644_v50  ;;  %v3248_v18 = vsel %vm752_vm6, 3e+38, %v3009_v25  ;;  %vm1887_vm8 = vcmp.eq.s32.totalorder %v3216_v16, %v2949_v34 }
 0x292   : > { %v3240_v44 = vadd.s32 %v745_v1, %v743_v30  ;;  %v728_v47 = vcvt.f32.s32 %v727_v41  ;;  %770 = vmin.xlane.f32.xlu0 %v769_v51  ;;  %vm1886_vm7 = vcmp.eq.s32.totalorder %v3230_v24, %v2949_v34  ;;  %vm751_vm9 = vcmp.eq.s32.totalorder %v2949_v34, %v3230_v24 }
 0x293   : > { %v778_v63 = vsel %vm586_vm2, %v3248_v18, inf  ;;  %v2645_v53 = vsel %vm1886_vm7, 1.0, %v4427_v8  ;;  %v3263_v25 = vsel %vm751_vm9, 3e+38, %v3015_v29  ;;  %v2646_v38 = vsel %vm1887_vm8, 1.0, %v4427_v8 }
 0x294   : > { %v3256_v58 = vadd.s32 %v730_v32, %v728_v47  ;;  %779 = vmin.xlane.f32.xlu1 %v778_v63  ;;  %2756 = vmatprep.mubr.msk.f32.mxu1 %vm586_vm2, %v2645_v53  ;;  %vm754_vm10 = vcmp.eq.s32.totalorder %v2949_v34, %v3240_v44  ;;  %v775_v46 = vsel %vm586_vm2, %v3263_v25, inf  ;;  %vm1889_vm12 = vcmp.eq.s32.totalorder %v3240_v44, %v2949_v34 }
 0x295   : > { %v3271_v42 = vsel %vm754_vm10, 3e+38, %v3021_v33  ;;  %2757 = vmatmul.mubr.msk.f32.gmra.mxu1 %vm586_vm2, %v2646_v38  ;;  %v2648_v55 = vsel %vm1889_vm12, 1.0, %v4427_v8 }
 0x296   : > { %vm1888_vm11 = vcmp.eq.s32.totalorder %v3256_v58, %v2949_v34  ;;  %776 = vmin.xlane.f32.xlu0 %v775_v46  ;;  %v784_v29 = vsel %vm586_vm2, %v3271_v42, inf  ;;  %vm753_vm13 = vcmp.eq.s32.totalorder %v2949_v34, %v3256_v58 }
 0x297   : > { %v2647_v59 = vsel %vm1888_vm11, 1.0, %v4427_v8  ;;  %v3285_v33 = vsel %vm753_vm13, 3e+38, %v3025_v37 }
 0x298   : > { %2759 = vmatprep.mubr.msk.f32.mxu1 %vm586_vm2, %v2647_v59  ;;  %785 = vmin.xlane.f32.xlu1 %v784_v29  ;;  %v781_v7 = vsel %vm586_vm2, %v3285_v33, inf }
 0x299   : > { %2760 = vmatmul.mubr.msk.f32.gmra.mxu1 %vm586_vm2, %v2648_v55 }
 0x29a   : > { %782 = vmin.xlane.f32.xlu0 %v781_v7 }
 0x314   : > { %v3291_v2 = vpop.xlane.xlu1 %767 }
 0x315   : > { %vm788_vm14 = vcmp.eq.f32.partialorder %v3192_v49, %v3291_v2 }
 0x316   : > { %v796_v12 = vsel %vm788_vm14, %v2949_v34, 64 }
 0x317   : > { %v818_v56 = vsel %vm586_vm2, %v796_v12, 2147483647  ;;  %v3297_v37 = vpop.xlane.xlu0 %764 }
 0x318   : > { %v820_v13 = vshra.s32 %v818_v56, 16  ;;  %vm787_vm15 = vcmp.eq.f32.partialorder %v3212_v23, %v3297_v37 }
 0x319   : > { %v3301_v17 = vpop.xlane.xlu1 %773  ;;  %v795_v19 = vsel %vm787_vm15, %v2949_v34, 64 }
 0x31a   : > { %v822_v15 = vcvt.s32.f32 %v820_v13  ;;  %vm790_vm1 = vcmp.eq.f32.partialorder %v3222_v27, %v3301_v17  ;;  %v803_v26 = vsel %vm586_vm2, %v795_v19, 2147483647 }
 0x31b   : > { %v3307_v4 = vpop.xlane.xlu0 %770  ;;  %v805_v20 = vshra.s32 %v803_v26, 16  ;;  %v798_v11 = vsel %vm790_vm1, %v2949_v34, 64  ;;  %v804_v3 = vand.u32 65535, %v803_v26  ;;  %vm1803_vm1 = vcmask 7168  }
 0x31c   : > { %823 = vmin.xlane.f32.xlu1 %v822_v15  ;;  %vm789_vm3 = vcmp.eq.f32.partialorder %v3236_v36, %v3307_v4  ;;  %v848_v22 = vsel %vm586_vm2, %v798_v11, 2147483647 }
 0x31d   : > { %v3313_v1 = vpop.xlane.xlu1 %779  ;;  %v807_v28 = vcvt.s32.f32 %v805_v20  ;;  %v850_v30 = vshra.s32 %v848_v22, 16  ;;  %v797_v32 = vsel %vm789_vm3, %v2949_v34, 64  ;;  %vm1812_vm3 = vcmask 15360  }
 0x31e   : > { %4443 = vst [vmem:[#allocation7_spill] sm:$0xff] %v3313_v1  ;;  %vm792_vm4 = vcmp.eq.f32.partialorder %v3248_v18, %v3313_v1  ;;  %v833_v10 = vsel %vm586_vm2, %v797_v32, 2147483647 }
 0x31f   : > { %808 = vmin.xlane.f32.xlu0 %v807_v28  ;;  %v3319_v41 = vpop.xlane.xlu0 %776  ;;  %v852_v50 = vcvt.s32.f32 %v850_v30  ;;  %v835_v51 = vshra.s32 %v833_v10, 16  ;;  %v800_v47 = vsel %vm792_vm4, %v2949_v34, 64  ;;  %v834_v60 = vand.u32 65535, %v833_v10 }
 0x320   : > { %4444 = vst [vmem:[#allocation8_spill] sm:$0xff] %v3319_v41  ;;  %vm791_vm5 = vcmp.eq.f32.partialorder %v3263_v25, %v3319_v41  ;;  %v878_v63 = vsel %vm586_vm2, %v800_v47, 2147483647 }
 0x321   : > { %853 = vmin.xlane.f32.xlu1 %v852_v50  ;;  %v3325_v53 = vpop.xlane.xlu1 %785  ;;  %v837_v38 = vcvt.s32.f32 %v835_v51  ;;  %v880_v46 = vshra.s32 %v878_v63, 16  ;;  %v799_v29 = vsel %vm791_vm5, %v2949_v34, 64 }
 0x322   : > { %4445 = vst [vmem:[#allocation9_spill] sm:$0xff] %v3325_v53  ;;  %vm794_vm6 = vcmp.eq.f32.partialorder %v3271_v42, %v3325_v53  ;;  %v863_v59 = vsel %vm586_vm2, %v799_v29, 2147483647  ;;  %v819_v29 = vand.u32 65535, %v818_v56  ;;  %v806_v53 = vcvt.s32.f32 %v804_v3 }
 0x323   : > { %838 = vmin.xlane.f32.xlu0 %v837_v38  ;;  %v3331_v7 = vpop.xlane.xlu0 %782  ;;  %v882_v55 = vcvt.s32.f32 %v880_v46  ;;  %v865_v12 = vshra.s32 %v863_v59, 16  ;;  %v802_v13 = vsel %vm794_vm6, %v2949_v34, 64  ;;  %v836_v56 = vcvt.s32.f32 %v834_v60 }
 0x324   : > { %4446 = vst [vmem:[#allocation10_spill] sm:$0xff] %v3331_v7  ;;  %vm793_vm7 = vcmp.eq.f32.partialorder %v3285_v33, %v3331_v7  ;;  %v908_v19 = vsel %vm586_vm2, %v802_v13, 2147483647  ;;  %v821_v9 = vcvt.s32.f32 %v819_v29  ;;  %v849_v13 = vand.u32 65535, %v848_v22 }
 0x325   : > { %883 = vmin.xlane.f32.xlu1 %v882_v55  ;;  %v867_v20 = vcvt.s32.f32 %v865_v12  ;;  %v910_v11 = vshra.s32 %v908_v19, 16  ;;  %v801_v30 = vsel %vm793_vm7, %v2949_v34, 64  ;;  %v864_v43 = vand.u32 65535, %v863_v59 }
 0x326   : > { %v893_v32 = vsel %vm586_vm2, %v801_v30, 2147483647  ;;  %v851_v54 = vcvt.s32.f32 %v849_v13  ;;  %v909_v22 = vand.u32 65535, %v908_v19  ;;  %v1804_v29 = vsel %vm1803_vm1, %v2947_v31, %v3186_v0 }
 0x327   : > { %868 = vmin.xlane.f32.xlu0 %v867_v20  ;;  %v912_v51 = vcvt.s32.f32 %v910_v11  ;;  %v895_v47 = vshra.s32 %v893_v32, 16  ;;  %v879_v11 = vand.u32 65535, %v878_v63  ;;  %v866_v10 = vcvt.s32.f32 %v864_v43 }
 0x329   : > { %913 = vmin.xlane.f32.xlu1 %v912_v51  ;;  %v897_v46 = vcvt.s32.f32 %v895_v47  ;;  %v881_v26 = vcvt.s32.f32 %v879_v11 }
 0x32b   : > { %898 = vmin.xlane.f32.xlu0 %v897_v46 }
 0x3a5   : > { %v824_v8 = vpop.xlane.xlu1 %823 }
 0x3a6   : > { %vm825_vm8 = vcmp.eq.f32.partialorder %v822_v15, %v824_v8  ;;  %v830_v43 = vcvt.f32.s32 %v824_v8  ;;  %v1806_v8 = vsel %vm1803_vm1, %v2962_v52, %v3205_v62  ;;  %v3370_v52 = vsel %vm1803_vm1, %v2995_v14, %v3240_v44 }
 0x3a7   : > { %v826_v7 = vsel %vm825_vm8, %v821_v9, inf }
 0x3a8   : > { %827 = vmin.xlane.f32.xlu1 %v826_v7  ;;  %v809_v12 = vpop.xlane.xlu0 %808 }
 0x3a9   : > { %vm810_vm9 = vcmp.eq.f32.partialorder %v807_v28, %v809_v12  ;;  %v815_v19 = vcvt.f32.s32 %v809_v12  ;;  %v1809_v12 = vsel %vm1803_vm1, %v2971_v61, %v3216_v16 }
 0x3aa   : > { %v854_v41 = vpop.xlane.xlu1 %853  ;;  %v811_v30 = vsel %vm810_vm9, %v806_v53, inf  ;;  %v894_v53 = vand.u32 65535, %v893_v32  ;;  %v1805_v32 = vsel %vm1803_vm1, %v2952_v35, %v3183_v57 }
 0x3ab   : > { %812 = vmin.xlane.f32.xlu0 %v811_v30  ;;  %vm855_vm10 = vcmp.eq.f32.partialorder %v852_v50, %v854_v41  ;;  %v816_v11 = vshll.u32 %v815_v19, 16 }
 0x3ac   : > { %v839_v47 = vpop.xlane.xlu0 %838  ;;  %v856_v1 = vsel %vm855_vm10, %v851_v54, inf  ;;  %v911_v54 = vcvt.s32.f32 %v909_v22 }
 0x3ad   : > { %857 = vmin.xlane.f32.xlu1 %v856_v1  ;;  %vm840_vm11 = vcmp.eq.f32.partialorder %v837_v38, %v839_v47  ;;  %v896_v38 = vcvt.s32.f32 %v894_v53  ;;  %v845_v35 = vcvt.f32.s32 %v839_v47 }
 0x3ae   : > { %v884_v15 = vpop.xlane.xlu1 %883  ;;  %v841_v9 = vsel %vm840_vm11, %v836_v56, inf }
 0x3af   : > { %842 = vmin.xlane.f32.xlu0 %v841_v9  ;;  %vm885_vm12 = vcmp.eq.f32.partialorder %v882_v55, %v884_v15  ;;  %v831_v55 = vshll.u32 %v830_v43, 16  ;;  %v890_v57 = vcvt.f32.s32 %v884_v15  ;;  %v846_v15 = vshll.u32 %v845_v35, 16 }
 0x3b0   : > { %v869_v3 = vpop.xlane.xlu0 %868  ;;  %v886_v28 = vsel %vm885_vm12, %v881_v26, inf }
 0x3b1   : > { %887 = vmin.xlane.f32.xlu1 %v886_v28  ;;  %vm870_vm13 = vcmp.eq.f32.partialorder %v867_v20, %v869_v3  ;;  %v891_v9 = vshll.u32 %v890_v57, 16  ;;  %v4447_v28 = vmov 0.0  }
 0x3b2   : > { %v3339_v63 = vpop.xlane.xlu1 %913  ;;  %v871_v50 = vsel %vm870_vm13, %v866_v10, inf }
 0x3b3   : > { %872 = vmin.xlane.f32.xlu0 %v871_v50  ;;  %vm915_vm14 = vcmp.eq.f32.partialorder %v912_v51, %v3339_v63  ;;  %v860_v51 = vcvt.f32.s32 %v854_v41  ;;  %v875_v41 = vcvt.f32.s32 %v869_v3 }
 0x3b4   : > { %v3342_v60 = vpop.xlane.xlu0 %898  ;;  %v916_v1 = vsel %vm915_vm14, %v911_v54, inf }
 0x3b5   : > { %917 = vmin.xlane.f32.xlu1 %v916_v1  ;;  %vm900_vm15 = vcmp.eq.f32.partialorder %v897_v46, %v3342_v60  ;;  %v1807_v46 = vsel %vm1803_vm1, %v2957_v45, %v3194_v5  ;;  %v1808_v45 = vsel %vm1803_vm1, %v2983_v6, %v3230_v24  ;;  %v861_v61 = vshll.u32 %v860_v51, 16 }
 0x3b6   : > { %v901_v59 = vsel %vm900_vm15, %v896_v38, inf  ;;  %v876_v6 = vshll.u32 %v875_v41, 16  ;;  %v920_v24 = vcvt.f32.s32 %v3339_v63  ;;  %v905_v22 = vcvt.f32.s32 %v3342_v60 }
 0x3b7   : > { %902 = vmin.xlane.f32.xlu0 %v901_v59 }
 0x3b8   : > { %v921_v60 = vshll.u32 %v920_v24, 16  ;;  %v906_v19 = vshll.u32 %v905_v22, 16 }
 0x431   : > { %v828_v7 = vpop.xlane.xlu1 %827 }
 0x432   : > { %v829_v20 = vcvt.f32.s32 %v828_v7 }
 0x434   : > { %v832_v13 = vadd.s32 %v831_v55, %v829_v20  ;;  %v813_v30 = vpop.xlane.xlu0 %812 }
 0x435   : > { %v814_v0 = vcvt.f32.s32 %v813_v30 }
 0x436   : > { %v3361_v31 = vsel %vm1812_vm3, %v1805_v32, %v832_v13  ;;  %vm924_vm4 = vcmp.eq.s32.totalorder %v2949_v34, %v832_v13  ;;  %v858_v5 = vpop.xlane.xlu1 %857  ;;  %vm2036_vm5 = vcmp.eq.s32.totalorder %v832_v13, %v2949_v34 }
 0x437   : > { %v3373_v62 = vsel %vm924_vm4, 3e+38, %v3192_v49  ;;  %v817_v16 = vadd.s32 %v816_v11, %v814_v0  ;;  %v859_v47 = vcvt.f32.s32 %v858_v5  ;;  %v2658_v53 = vsel %vm2036_vm5, 1.0, %v4447_v28 }
 0x438   : > { %v942_v56 = vsel %vm586_vm2, %v3373_v62, inf  ;;  %v843_v26 = vpop.xlane.xlu0 %842 }
 0x439   : > { %943 = vmin.xlane.f32.xlu1 %v942_v56  ;;  %v3380_v14 = vsel %vm1812_vm3, %v1804_v29, %v817_v16  ;;  %v862_v44 = vadd.s32 %v861_v61, %v859_v47  ;;  %v844_v49 = vcvt.f32.s32 %v843_v26  ;;  %vm2035_vm6 = vcmp.eq.s32.totalorder %v817_v16, %v2949_v34 }
 0x43a   : > { %v888_v3 = vpop.xlane.xlu1 %887  ;;  %v2657_v10 = vsel %vm2035_vm6, 1.0, %v4447_v28  ;;  %vm923_vm7 = vcmp.eq.s32.totalorder %v2949_v34, %v817_v16 }
 0x43b   : > { %v3390_v63 = vsel %vm1812_vm3, %v1807_v46, %v862_v44  ;;  %v847_v50 = vadd.s32 %v846_v15, %v844_v49  ;;  %v889_v54 = vcvt.f32.s32 %v888_v3  ;;  %2778 = vmatprep.mubr.msk.f32.mxu0 %vm586_vm2, %v2657_v10  ;;  %v3394_v1 = vsel %vm923_vm7, 3e+38, %v3212_v23 }
 0x43c   : > { %2779 = vmatmul.mubr.msk.f32.vlgmr.msra.gmra.mxu0 %vm586_vm2, %v2658_v53  ;;  %v939_v38 = vsel %vm586_vm2, %v3394_v1, inf  ;;  %v873_v59 = vpop.xlane.xlu0 %872  ;;  %vm926_vm8 = vcmp.eq.s32.totalorder %v2949_v34, %v862_v44  ;;  %vm2038_vm9 = vcmp.eq.s32.totalorder %v862_v44, %v2949_v34 }
 0x43d   : > { %v3402_v43 = vsel %vm1812_vm3, %v1806_v8, %v847_v50  ;;  %v892_v7 = vadd.s32 %v891_v9, %v889_v54  ;;  %940 = vmin.xlane.f32.xlu0 %v939_v38  ;;  %v874_v55 = vcvt.f32.s32 %v873_v59  ;;  %v3405_v23 = vsel %vm926_vm8, 3e+38, %v3222_v27 }
 0x43e   : > { %v948_v20 = vsel %vm586_vm2, %v3405_v23, inf  ;;  %v918_v32 = vpop.xlane.xlu1 %917  ;;  %vm2037_vm10 = vcmp.eq.s32.totalorder %v847_v50, %v2949_v34  ;;  %vm925_vm11 = vcmp.eq.s32.totalorder %v2949_v34, %v847_v50  ;;  %v2660_v27 = vsel %vm2038_vm9, 1.0, %v4447_v28 }
 0x43f   : > { %v3412_v51 = vsel %vm1812_vm3, %v1809_v12, %v892_v7  ;;  %v877_v29 = vadd.s32 %v876_v6, %v874_v55  ;;  %949 = vmin.xlane.f32.xlu1 %v948_v20  ;;  %v919_v46 = vcvt.f32.s32 %v918_v32  ;;  %v2659_v8 = vsel %vm2037_vm10, 1.0, %v4447_v28 }
 0x440   : > { %2781 = vmatprep.mubr.msk.f32.mxu0 %vm586_vm2, %v2659_v8  ;;  %v3420_v13 = vsel %vm925_vm11, 3e+38, %v3236_v36  ;;  %v903_v35 = vpop.xlane.xlu0 %902  ;;  %vm928_vm12 = vcmp.eq.s32.totalorder %v2949_v34, %v892_v7  ;;  %vm2040_vm13 = vcmp.eq.s32.totalorder %v892_v7, %v2949_v34  ;;  %v1810_v36 = vsel %vm1803_vm1, %v3007_v21, %v3256_v58 }
 0x441   : > { %v3425_v12 = vsel %vm1812_vm3, %v1808_v45, %v877_v29  ;;  %v922_v57 = vadd.s32 %v921_v60, %v919_v46  ;;  %2782 = vmatmul.mubr.msk.f32.gmra.mxu0 %vm586_vm2, %v2660_v27  ;;  %v945_v41 = vsel %vm586_vm2, %v3420_v13, inf  ;;  %v904_v30 = vcvt.f32.s32 %v903_v35 }
 0x442   : > { %946 = vmin.xlane.f32.xlu0 %v945_v41  ;;  %v3434_v11 = vsel %vm928_vm12, 3e+38, %v3248_v18  ;;  %vm2039_vm14 = vcmp.eq.s32.totalorder %v877_v29, %v2949_v34  ;;  %vm927_vm15 = vcmp.eq.s32.totalorder %v2949_v34, %v877_v29  ;;  %v2662_v21 = vsel %vm2040_vm13, 1.0, %v4447_v28 }
 0x443   : > { %v3440_v0 = vsel %vm1812_vm3, %v3370_v52, %v922_v57  ;;  %v907_v45 = vadd.s32 %v906_v19, %v904_v30  ;;  %v954_v61 = vsel %vm586_vm2, %v3434_v11, inf  ;;  %v2661_v5 = vsel %vm2039_vm14, 1.0, %v4447_v28 }
 0x444   : > { %955 = vmin.xlane.f32.xlu1 %v954_v61  ;;  %2784 = vmatprep.mubr.msk.f32.mxu0 %vm586_vm2, %v2661_v5  ;;  %v3450_v18 = vsel %vm927_vm15, 3e+38, %v3263_v25  ;;  %vm930_vm4 = vcmp.eq.s32.totalorder %v2949_v34, %v922_v57  ;;  %vm2042_vm5 = vcmp.eq.s32.totalorder %v922_v57, %v2949_v34 }
 0x445   : > { %v3455_v58 = vsel %vm1812_vm3, %v1810_v36, %v907_v45  ;;  %2785 = vmatmul.mubr.msk.f32.gmra.mxu0 %vm586_vm2, %v2662_v21  ;;  %v951_v52 = vsel %vm586_vm2, %v3450_v18, inf  ;;  %v3461_v16 = vsel %vm930_vm4, 3e+38, %v3271_v42  ;;  %vm2041_vm6 = vcmp.eq.s32.totalorder %v907_v45, %v2949_v34 }
 0x446   : > { %952 = vmin.xlane.f32.xlu0 %v951_v52  ;;  %v960_v25 = vsel %vm586_vm2, %v3461_v16, inf  ;;  %v2663_v47 = vsel %vm2041_vm6, 1.0, %v4447_v28  ;;  %vm929_vm7 = vcmp.eq.s32.totalorder %v2949_v34, %v907_v45  ;;  %v2664_v15 = vsel %vm2042_vm5, 1.0, %v4447_v28 }
 0x447   : > { %2787 = vmatprep.mubr.msk.f32.mxu0 %vm586_vm2, %v2663_v47  ;;  %v3470_v56 = vsel %vm929_vm7, 3e+38, %v3285_v33 }
 0x448   : > { %961 = vmin.xlane.f32.xlu1 %v960_v25  ;;  %v957_v42 = vsel %vm586_vm2, %v3470_v56, inf }
 0x449   : > { %2788 = vmatmul.mubr.msk.f32.gmra.mxu0 %vm586_vm2, %v2664_v15 }
 0x44a   : > { %958 = vmin.xlane.f32.xlu0 %v957_v42 }
 0x4c2   : > { %v944_v9 = vpop.xlane.xlu1 %943 }
 0x4c3   : > { %vm964_vm8 = vcmp.eq.f32.partialorder %v3373_v62, %v944_v9 }
 0x4c4   : > { %v972_v6 = vsel %vm964_vm8, %v2949_v34, 64 }
 0x4c5   : > { %v994_v24 = vsel %vm586_vm2, %v972_v6, 2147483647 }
 0x4c6   : > { %v996_v26 = vshra.s32 %v994_v24, 16  ;;  %v941_v44 = vpop.xlane.xlu0 %940  ;;  %v995_v9 = vand.u32 65535, %v994_v24 }
 0x4c7   : > { %vm963_vm9 = vcmp.eq.f32.partialorder %v3394_v1, %v941_v44 }
 0x4c8   : > { %v998_v33 = vcvt.s32.f32 %v996_v26  ;;  %v971_v49 = vsel %vm963_vm9, %v2949_v34, 64  ;;  %v950_v22 = vpop.xlane.xlu1 %949  ;;  %v997_v26 = vcvt.s32.f32 %v995_v9 }
 0x4c9   : > { %vm966_vm10 = vcmp.eq.f32.partialorder %v3405_v23, %v950_v22  ;;  %v979_v3 = vsel %vm586_vm2, %v971_v49, 2147483647 }
 0x4ca   : > { %999 = vmin.xlane.f32.xlu1 %v998_v33  ;;  %v974_v28 = vsel %vm966_vm10, %v2949_v34, 64  ;;  %v981_v10 = vshra.s32 %v979_v3, 16  ;;  %v980_v44 = vand.u32 65535, %v979_v3 }
 0x4cb   : > { %v947_v53 = vpop.xlane.xlu0 %946  ;;  %v1024_v50 = vsel %vm586_vm2, %v974_v28, 2147483647 }
 0x4cc   : > { %vm965_vm11 = vcmp.eq.f32.partialorder %v3420_v13, %v947_v53  ;;  %v983_v54 = vcvt.s32.f32 %v981_v10  ;;  %v1026_v60 = vshra.s32 %v1024_v50, 16  ;;  %v1025_v22 = vand.u32 65535, %v1024_v50 }
 0x4cd   : > { %v973_v38 = vsel %vm965_vm11, %v2949_v34, 64  ;;  %v956_v59 = vpop.xlane.xlu1 %955  ;;  %v982_v10 = vcvt.s32.f32 %v980_v44 }
 0x4ce   : > { %vm968_vm12 = vcmp.eq.f32.partialorder %v3434_v11, %v956_v59  ;;  %984 = vmin.xlane.f32.xlu0 %v983_v54  ;;  %v1028_v7 = vcvt.s32.f32 %v1026_v60  ;;  %v1009_v55 = vsel %vm586_vm2, %v973_v38, 2147483647  ;;  %v1027_v59 = vcvt.s32.f32 %v1025_v22 }
 0x4cf   : > { %v976_v19 = vsel %vm968_vm12, %v2949_v34, 64  ;;  %v953_v20 = vpop.xlane.xlu0 %952  ;;  %v1011_v32 = vshra.s32 %v1009_v55, 16  ;;  %v1010_v53 = vand.u32 65535, %v1009_v55  ;;  %vm1821_vm12 = vcmask 23552  }
 0x4d0   : > { %vm967_vm13 = vcmp.eq.f32.partialorder %v3450_v18, %v953_v20  ;;  %1029 = vmin.xlane.f32.xlu1 %v1028_v7  ;;  %v1054_v29 = vsel %vm586_vm2, %v976_v19, 2147483647 }
 0x4d1   : > { %v975_v46 = vsel %vm967_vm13, %v2949_v34, 64  ;;  %v962_v8 = vpop.xlane.xlu1 %961  ;;  %v1013_v27 = vcvt.s32.f32 %v1011_v32  ;;  %v1056_v35 = vshra.s32 %v1054_v29, 16  ;;  %v1055_v19 = vand.u32 65535, %v1054_v29 }
 0x4d2   : > { %vm970_vm14 = vcmp.eq.f32.partialorder %v3461_v16, %v962_v8  ;;  %v1039_v57 = vsel %vm586_vm2, %v975_v46, 2147483647  ;;  %v1012_v24 = vcvt.s32.f32 %v1010_v53 }
 0x4d3   : > { %v978_v41 = vsel %vm970_vm14, %v2949_v34, 64  ;;  %1014 = vmin.xlane.f32.xlu0 %v1013_v27  ;;  %v959_v30 = vpop.xlane.xlu0 %958  ;;  %v1058_v36 = vcvt.s32.f32 %v1056_v35  ;;  %v1041_v45 = vshra.s32 %v1039_v57, 16  ;;  %v1040_v46 = vand.u32 65535, %v1039_v57 }
 0x4d4   : > { %vm969_vm15 = vcmp.eq.f32.partialorder %v3470_v56, %v959_v30  ;;  %v1084_v61 = vsel %vm586_vm2, %v978_v41, 2147483647  ;;  %v1057_v8 = vcvt.s32.f32 %v1055_v19 }
 0x4d5   : > { %v977_v5 = vsel %vm969_vm15, %v2949_v34, 64  ;;  %1059 = vmin.xlane.f32.xlu1 %v1058_v36  ;;  %v1043_v21 = vcvt.s32.f32 %v1041_v45  ;;  %v1086_v52 = vshra.s32 %v1084_v61, 16  ;;  %v1085_v50 = vand.u32 65535, %v1084_v61 }
 0x4d6   : > { %v1069_v25 = vsel %vm586_vm2, %v977_v5, 2147483647  ;;  %v1042_v35 = vcvt.s32.f32 %v1040_v46 }
 0x4d7   : > { %1044 = vmin.xlane.f32.xlu0 %v1043_v21  ;;  %v1088_v47 = vcvt.s32.f32 %v1086_v52  ;;  %v1071_v15 = vshra.s32 %v1069_v25, 16  ;;  %v1070_v41 = vand.u32 65535, %v1069_v25  ;;  %v1087_v30 = vcvt.s32.f32 %v1085_v50 }
 0x4d9   : > { %1089 = vmin.xlane.f32.xlu1 %v1088_v47  ;;  %v1073_v42 = vcvt.s32.f32 %v1071_v15  ;;  %v1072_v57 = vcvt.s32.f32 %v1070_v41 }
 0x4db   : > { %1074 = vmin.xlane.f32.xlu0 %v1073_v42 }
 0x553   : > { %v1000_v6 = vpop.xlane.xlu1 %999 }
 0x554   : > { %vm1001_vm4 = vcmp.eq.f32.partialorder %v998_v33, %v1000_v6 }
 0x555   : > { %v1002_v49 = vsel %vm1001_vm4, %v997_v26, inf }
 0x556   : > { %1003 = vmin.xlane.f32.xlu1 %v1002_v49 }
 0x557   : > { %v985_v28 = vpop.xlane.xlu0 %984 }
 0x558   : > { %vm986_vm5 = vcmp.eq.f32.partialorder %v983_v54, %v985_v28  ;;  %v991_v15 = vcvt.f32.s32 %v985_v28 }
 0x559   : > { %v1030_v60 = vpop.xlane.xlu1 %1029  ;;  %v987_v38 = vsel %vm986_vm5, %v982_v10, inf }
 0x55a   : > { %988 = vmin.xlane.f32.xlu0 %v987_v38  ;;  %vm1031_vm6 = vcmp.eq.f32.partialorder %v1028_v7, %v1030_v60  ;;  %v1036_v9 = vcvt.f32.s32 %v1030_v60  ;;  %v992_v44 = vshll.u32 %v991_v15, 16 }
 0x55b   : > { %v1032_v20 = vsel %vm1031_vm6, %v1027_v59, inf }
 0x55c   : > { %v1015_v32 = vpop.xlane.xlu0 %1014  ;;  %1033 = vmin.xlane.f32.xlu1 %v1032_v20  ;;  %v1037_v10 = vshll.u32 %v1036_v9, 16 }
 0x55d   : > { %vm1016_vm7 = vcmp.eq.f32.partialorder %v1013_v27, %v1015_v32 }
 0x55e   : > { %v1060_v33 = vpop.xlane.xlu1 %1059  ;;  %v1017_v3 = vsel %vm1016_vm7, %v1012_v24, inf }
 0x55f   : > { %1018 = vmin.xlane.f32.xlu0 %v1017_v3  ;;  %vm1061_vm8 = vcmp.eq.f32.partialorder %v1058_v36, %v1060_v33  ;;  %v1006_v36 = vcvt.f32.s32 %v1000_v6  ;;  %v1021_v6 = vcvt.f32.s32 %v1015_v32  ;;  %v1066_v38 = vcvt.f32.s32 %v1060_v33 }
 0x560   : > { %v1045_v54 = vpop.xlane.xlu0 %1044  ;;  %v1062_v55 = vsel %vm1061_vm8, %v1057_v8, inf }
 0x561   : > { %1063 = vmin.xlane.f32.xlu1 %v1062_v55  ;;  %vm1046_vm9 = vcmp.eq.f32.partialorder %v1043_v21, %v1045_v54  ;;  %v1007_v52 = vshll.u32 %v1006_v36, 16 }
 0x562   : > { %v1090_v7 = vpop.xlane.xlu1 %1089  ;;  %v1047_v29 = vsel %vm1046_vm9, %v1042_v35, inf }
 0x563   : > { %1048 = vmin.xlane.f32.xlu0 %v1047_v29  ;;  %vm1091_vm10 = vcmp.eq.f32.partialorder %v1088_v47, %v1090_v7  ;;  %v1096_v46 = vcvt.f32.s32 %v1090_v7 }
 0x564   : > { %v3500_v45 = vpop.xlane.xlu0 %1074  ;;  %v1092_v27 = vsel %vm1091_vm10, %v1087_v30, inf }
 0x565   : > { %1093 = vmin.xlane.f32.xlu1 %v1092_v27  ;;  %vm1076_vm11 = vcmp.eq.f32.partialorder %v1073_v42, %v3500_v45  ;;  %v1081_v35 = vcvt.f32.s32 %v3500_v45  ;;  %v1097_v27 = vshll.u32 %v1096_v46, 16 }
 0x566   : > { %v1077_v61 = vsel %vm1076_vm11, %v1072_v57, inf }
 0x567   : > { %1078 = vmin.xlane.f32.xlu0 %v1077_v61 }
 0x5df   : > { %v1004_v5 = vpop.xlane.xlu1 %1003 }
 0x5e0   : > { %v1005_v25 = vcvt.f32.s32 %v1004_v5  ;;  %v1082_v5 = vshll.u32 %v1081_v35, 16 }
 0x5e2   : > { %v1008_v21 = vadd.s32 %v1007_v52, %v1005_v25 }
 0x5e3   : > { %v989_v26 = vpop.xlane.xlu0 %988 }
 0x5e4   : > { %v3505_v47 = vsel %vm1821_vm12, %v3361_v31, %v1008_v21  ;;  %vm1100_vm13 = vcmp.eq.s32.totalorder %v2949_v34, %v1008_v21  ;;  %v990_v49 = vcvt.f32.s32 %v989_v26  ;;  %v1051_v31 = vcvt.f32.s32 %v1045_v54 }
 0x5e5   : > { %v3509_v42 = vsel %vm1100_vm13, 3e+38, %v3373_v62  ;;  %v1034_v22 = vpop.xlane.xlu1 %1033  ;;  %v1022_v62 = vshll.u32 %v1021_v6, 16 }
 0x5e6   : > { %v1118_v28 = vsel %vm586_vm2, %v3509_v42, inf  ;;  %v993_v53 = vadd.s32 %v992_v44, %v990_v49  ;;  %v1035_v60 = vcvt.f32.s32 %v1034_v22 }
 0x5e7   : > { %1119 = vmin.xlane.f32.xlu1 %v1118_v28 }
 0x5e8   : > { %v3515_v59 = vsel %vm1821_vm12, %v3380_v14, %v993_v53  ;;  %v1038_v19 = vadd.s32 %v1037_v10, %v1035_v60  ;;  %v1019_v20 = vpop.xlane.xlu0 %1018  ;;  %vm1099_vm14 = vcmp.eq.s32.totalorder %v2949_v34, %v993_v53  ;;  %v1067_v14 = vshll.u32 %v1066_v38, 16 }
 0x5e9   : > { %v1020_v32 = vcvt.f32.s32 %v1019_v20  ;;  %v3519_v24 = vsel %vm1099_vm14, 3e+38, %v3394_v1  ;;  %v1052_v1 = vshll.u32 %v1051_v31, 16 }
 0x5ea   : > { %v3523_v3 = vsel %vm1821_vm12, %v3390_v63, %v1038_v19  ;;  %v1064_v33 = vpop.xlane.xlu1 %1063  ;;  %v1115_v8 = vsel %vm586_vm2, %v3519_v24, inf  ;;  %vm1102_vm15 = vcmp.eq.s32.totalorder %v2949_v34, %v1038_v19 }
 0x5eb   : > { %v1023_v50 = vadd.s32 %v1022_v62, %v1020_v32  ;;  %v1065_v54 = vcvt.f32.s32 %v1064_v33  ;;  %1116 = vmin.xlane.f32.xlu0 %v1115_v8  ;;  %v3529_v55 = vsel %vm1102_vm15, 3e+38, %v3405_v23 }
 0x5ec   : > { %v1049_v41 = vpop.xlane.xlu0 %1048  ;;  %v1124_v63 = vsel %vm586_vm2, %v3529_v55, inf }
 0x5ed   : > { %v3536_v7 = vsel %vm1821_vm12, %v3402_v43, %v1023_v50  ;;  %v1068_v29 = vadd.s32 %v1067_v14, %v1065_v54  ;;  %v1050_v30 = vcvt.f32.s32 %v1049_v41  ;;  %1125 = vmin.xlane.f32.xlu1 %v1124_v63  ;;  %vm1101_vm4 = vcmp.eq.s32.totalorder %v2949_v34, %v1023_v50 }
 0x5ee   : > { %v1094_v57 = vpop.xlane.xlu1 %1093  ;;  %v3540_v23 = vsel %vm1101_vm4, 3e+38, %v3420_v13 }
 0x5ef   : > { %v3544_v45 = vsel %vm1821_vm12, %v3412_v51, %v1068_v29  ;;  %v1053_v61 = vadd.s32 %v1052_v1, %v1050_v30  ;;  %v1095_v36 = vcvt.f32.s32 %v1094_v57  ;;  %v1121_v43 = vsel %vm586_vm2, %v3540_v23, inf }
 0x5f0   : > { %1122 = vmin.xlane.f32.xlu0 %v1121_v43  ;;  %v1079_v52 = vpop.xlane.xlu0 %1078  ;;  %vm1104_vm5 = vcmp.eq.s32.totalorder %v2949_v34, %v1068_v29 }
 0x5f1   : > { %v3551_v25 = vsel %vm1821_vm12, %v3425_v12, %v1053_v61  ;;  %v1098_v13 = vadd.s32 %v1097_v27, %v1095_v36  ;;  %v1080_v15 = vcvt.f32.s32 %v1079_v52  ;;  %v3554_v21 = vsel %vm1104_vm5, 3e+38, %v3434_v11 }
 0x5f2   : > { %v1130_v51 = vsel %vm586_vm2, %v3554_v21, inf  ;;  %vm1103_vm6 = vcmp.eq.s32.totalorder %v2949_v34, %v1053_v61 }
 0x5f3   : > { %v3561_v9 = vsel %vm1821_vm12, %v3440_v0, %v1098_v13  ;;  %v1083_v26 = vadd.s32 %v1082_v5, %v1080_v15  ;;  %1131 = vmin.xlane.f32.xlu1 %v1130_v51  ;;  %v3564_v44 = vsel %vm1103_vm6, 3e+38, %v3450_v18  ;;  %vm1106_vm7 = vcmp.eq.s32.totalorder %v2949_v34, %v1098_v13 }
 0x5f4   : > { %v1127_v12 = vsel %vm586_vm2, %v3564_v44, inf  ;;  %v3570_v11 = vsel %vm1106_vm7, 3e+38, %v3461_v16 }
 0x5f5   : > { %v3574_v49 = vsel %vm1821_vm12, %v3455_v58, %v1083_v26  ;;  %1128 = vmin.xlane.f32.xlu0 %v1127_v12  ;;  %v1136_v0 = vsel %vm586_vm2, %v3570_v11, inf  ;;  %vm1105_vm8 = vcmp.eq.s32.totalorder %v2949_v34, %v1083_v26 }
 0x5f6   : > { %v3580_v18 = vsel %vm1105_vm8, 3e+38, %v3470_v56 }
 0x5f7   : > { %1137 = vmin.xlane.f32.xlu1 %v1136_v0  ;;  %v1133_v6 = vsel %vm586_vm2, %v3580_v18, inf }
 0x5f9   : > { %1134 = vmin.xlane.f32.xlu0 %v1133_v6 }
 0x670   : > { %v1120_v16 = vpop.xlane.xlu1 %1119 }
 0x671   : > { %vm1140_vm9 = vcmp.eq.f32.partialorder %v3509_v42, %v1120_v16 }
 0x672   : > { %v1148_v58 = vsel %vm1140_vm9, %v2949_v34, 64 }
 0x673   : > { %v1170_v22 = vsel %vm586_vm2, %v1148_v58, 2147483647 }
 0x674   : > { %v1172_v28 = vshra.s32 %v1170_v22, 16  ;;  %v1117_v10 = vpop.xlane.xlu0 %1116  ;;  %v1171_v16 = vand.u32 65535, %v1170_v22 }
 0x675   : > { %vm1139_vm10 = vcmp.eq.f32.partialorder %v3519_v24, %v1117_v10 }
 0x676   : > { %v1174_v53 = vcvt.s32.f32 %v1172_v28  ;;  %v1147_v56 = vsel %vm1139_vm10, %v2949_v34, 64  ;;  %v1126_v60 = vpop.xlane.xlu1 %1125  ;;  %v1173_v28 = vcvt.s32.f32 %v1171_v16 }
 0x677   : > { %vm1142_vm11 = vcmp.eq.f32.partialorder %v3529_v55, %v1126_v60  ;;  %v1155_v38 = vsel %vm586_vm2, %v1147_v56, 2147483647 }
 0x678   : > { %1175 = vmin.xlane.f32.xlu1 %v1174_v53  ;;  %v1150_v31 = vsel %vm1142_vm11, %v2949_v34, 64  ;;  %v1157_v19 = vshra.s32 %v1155_v38, 16  ;;  %v1156_v10 = vand.u32 65535, %v1155_v38 }
 0x679   : > { %v1123_v20 = vpop.xlane.xlu0 %1122  ;;  %v1200_v62 = vsel %vm586_vm2, %v1150_v31, 2147483647 }
 0x67a   : > { %vm1141_vm12 = vcmp.eq.f32.partialorder %v3540_v23, %v1123_v20  ;;  %v1159_v32 = vcvt.s32.f32 %v1157_v19  ;;  %v1202_v46 = vshra.s32 %v1200_v62, 16  ;;  %v1201_v60 = vand.u32 65535, %v1200_v62 }
 0x67b   : > { %v1149_v33 = vsel %vm1141_vm12, %v2949_v34, 64  ;;  %v1158_v19 = vcvt.s32.f32 %v1156_v10 }
 0x67c   : > { %v1132_v8 = vpop.xlane.xlu1 %1131  ;;  %1160 = vmin.xlane.f32.xlu0 %v1159_v32  ;;  %v1204_v14 = vcvt.s32.f32 %v1202_v46  ;;  %v1185_v50 = vsel %vm586_vm2, %v1149_v33, 2147483647 }
 0x67d   : > { %vm1144_vm13 = vcmp.eq.f32.partialorder %v3554_v21, %v1132_v8  ;;  %v1187_v54 = vshra.s32 %v1185_v50, 16  ;;  %v1186_v20 = vand.u32 65535, %v1185_v50  ;;  %v1203_v8 = vcvt.s32.f32 %v1201_v60 }
 0x67e   : > { %v1152_v1 = vsel %vm1144_vm13, %v2949_v34, 64  ;;  %v1129_v35 = vpop.xlane.xlu0 %1128  ;;  %1205 = vmin.xlane.f32.xlu1 %v1204_v14  ;;  %vm1830_vm13 = vcmask 31744  }
 0x67f   : > { %vm1143_vm14 = vcmp.eq.f32.partialorder %v3564_v44, %v1129_v35  ;;  %v1189_v41 = vcvt.s32.f32 %v1187_v54  ;;  %v1230_v63 = vsel %vm586_vm2, %v1152_v1, 2147483647  ;;  %v1188_v22 = vcvt.s32.f32 %v1186_v20 }
 0x680   : > { %v1151_v29 = vsel %vm1143_vm14, %v2949_v34, 64  ;;  %v1138_v30 = vpop.xlane.xlu1 %1137  ;;  %v1232_v27 = vshra.s32 %v1230_v63, 16  ;;  %v1231_v54 = vand.u32 65535, %v1230_v63 }
 0x681   : > { %vm1146_vm15 = vcmp.eq.f32.partialorder %v3570_v11, %v1138_v30  ;;  %1190 = vmin.xlane.f32.xlu0 %v1189_v41  ;;  %v1215_v57 = vsel %vm586_vm2, %v1151_v29, 2147483647 }
 0x682   : > { %v1154_v61 = vsel %vm1146_vm15, %v2949_v34, 64  ;;  %v1135_v36 = vpop.xlane.xlu0 %1134  ;;  %v1234_v43 = vcvt.s32.f32 %v1232_v27  ;;  %v1217_v5 = vshra.s32 %v1215_v57, 16  ;;  %v1216_v29 = vand.u32 65535, %v1215_v57 }
 0x683   : > { %vm1145_vm4 = vcmp.eq.f32.partialorder %v3580_v18, %v1135_v36  ;;  %v1260_v52 = vsel %vm586_vm2, %v1154_v61, 2147483647  ;;  %v1233_v30 = vcvt.s32.f32 %v1231_v54 }
 0x684   : > { %v1153_v13 = vsel %vm1145_vm4, %v2949_v34, 64  ;;  %1235 = vmin.xlane.f32.xlu1 %v1234_v43  ;;  %v1219_v15 = vcvt.s32.f32 %v1217_v5  ;;  %v1262_v51 = vshra.s32 %v1260_v52, 16  ;;  %v1261_v38 = vand.u32 65535, %v1260_v52 }
 0x685   : > { %v1245_v26 = vsel %vm586_vm2, %v1153_v13, 2147483647  ;;  %v1218_v61 = vcvt.s32.f32 %v1216_v29 }
 0x686   : > { %1220 = vmin.xlane.f32.xlu0 %v1219_v15  ;;  %v1264_v12 = vcvt.s32.f32 %v1262_v51  ;;  %v1247_v0 = vshra.s32 %v1245_v26, 16  ;;  %v1246_v50 = vand.u32 65535, %v1245_v26  ;;  %v1263_v36 = vcvt.s32.f32 %v1261_v38 }
 0x688   : > { %1265 = vmin.xlane.f32.xlu1 %v1264_v12  ;;  %v1249_v6 = vcvt.s32.f32 %v1247_v0  ;;  %v1248_v5 = vcvt.s32.f32 %v1246_v50 }
 0x68a   : > { %1250 = vmin.xlane.f32.xlu0 %v1249_v6 }
 0x701   : > { %v1176_v58 = vpop.xlane.xlu1 %1175 }
 0x702   : > { %vm1177_vm5 = vcmp.eq.f32.partialorder %v1174_v53, %v1176_v58  ;;  %v1182_v52 = vcvt.f32.s32 %v1176_v58 }
 0x703   : > { %v1178_v56 = vsel %vm1177_vm5, %v1173_v28, inf }
 0x704   : > { %1179 = vmin.xlane.f32.xlu1 %v1178_v56  ;;  %v1183_v51 = vshll.u32 %v1182_v52, 16 }
 0x705   : > { %v1161_v31 = vpop.xlane.xlu0 %1160 }
 0x706   : > { %vm1162_vm6 = vcmp.eq.f32.partialorder %v1159_v32, %v1161_v31  ;;  %v1167_v0 = vcvt.f32.s32 %v1161_v31 }
 0x707   : > { %v1206_v46 = vpop.xlane.xlu1 %1205  ;;  %v1163_v33 = vsel %vm1162_vm6, %v1158_v19, inf }
 0x708   : > { %1164 = vmin.xlane.f32.xlu0 %v1163_v33  ;;  %vm1207_vm7 = vcmp.eq.f32.partialorder %v1204_v14, %v1206_v46  ;;  %v1212_v16 = vcvt.f32.s32 %v1206_v46  ;;  %v1168_v10 = vshll.u32 %v1167_v0, 16 }
 0x709   : > { %v1208_v1 = vsel %vm1207_vm7, %v1203_v8, inf }
 0x70a   : > { %v1191_v35 = vpop.xlane.xlu0 %1190  ;;  %1209 = vmin.xlane.f32.xlu1 %v1208_v1  ;;  %v1213_v19 = vshll.u32 %v1212_v16, 16 }
 0x70b   : > { %vm1192_vm8 = vcmp.eq.f32.partialorder %v1189_v41, %v1191_v35  ;;  %v1197_v58 = vcvt.f32.s32 %v1191_v35 }
 0x70c   : > { %v1193_v53 = vsel %vm1192_vm8, %v1188_v22, inf }
 0x70d   : > { %v1236_v62 = vpop.xlane.xlu1 %1235  ;;  %1194 = vmin.xlane.f32.xlu0 %v1193_v53 }
 0x70e   : > { %vm1237_vm9 = vcmp.eq.f32.partialorder %v1234_v43, %v1236_v62  ;;  %v1242_v33 = vcvt.f32.s32 %v1236_v62 }
 0x70f   : > { %v3608_v32 = vpop.xlane.xlu0 %1220  ;;  %v1238_v27 = vsel %vm1237_vm9, %v1233_v30, inf }
 0x710   : > { %1239 = vmin.xlane.f32.xlu1 %v1238_v27  ;;  %vm1222_vm10 = vcmp.eq.f32.partialorder %v1219_v15, %v3608_v32  ;;  %v1227_v22 = vcvt.f32.s32 %v3608_v32 }
 0x711   : > { %v1266_v14 = vpop.xlane.xlu1 %1265  ;;  %v1223_v63 = vsel %vm1222_vm10, %v1218_v61, inf }
 0x712   : > { %1224 = vmin.xlane.f32.xlu0 %v1223_v63  ;;  %vm1267_vm11 = vcmp.eq.f32.partialorder %v1264_v12, %v1266_v14 }
 0x713   : > { %v3611_v41 = vpop.xlane.xlu0 %1250  ;;  %v1268_v57 = vsel %vm1267_vm11, %v1263_v36, inf }
 0x714   : > { %1269 = vmin.xlane.f32.xlu1 %v1268_v57  ;;  %vm1252_vm12 = vcmp.eq.f32.partialorder %v1249_v6, %v3611_v41 }
 0x715   : > { %v1253_v43 = vsel %vm1252_vm12, %v1248_v5, inf }
 0x716   : > { %1254 = vmin.xlane.f32.xlu0 %v1253_v43 }
 0x78d   : > { %v1180_v13 = vpop.xlane.xlu1 %1179 }
 0x78e   : > { %v1181_v26 = vcvt.f32.s32 %v1180_v13 }
 0x790   : > { %v1184_v15 = vadd.s32 %v1183_v51, %v1181_v26 }
 0x791   : > { %v1165_v28 = vpop.xlane.xlu0 %1164 }
 0x792   : > { %v3616_v12 = vsel %vm1830_vm13, %v3505_v47, %v1184_v15  ;;  %vm1276_vm14 = vcmp.eq.s32.totalorder %v2949_v34, %v1184_v15  ;;  %v1166_v56 = vcvt.f32.s32 %v1165_v28 }
 0x793   : > { %v3620_v6 = vsel %vm1276_vm14, 3e+38, %v3509_v42  ;;  %v1210_v60 = vpop.xlane.xlu1 %1209  ;;  %v1198_v42 = vshll.u32 %v1197_v58, 16 }
 0x794   : > { %v1294_v31 = vsel %vm586_vm2, %v3620_v6, inf  ;;  %v1169_v20 = vadd.s32 %v1168_v10, %v1166_v56  ;;  %v1211_v46 = vcvt.f32.s32 %v1210_v60 }
 0x795   : > { %1295 = vmin.xlane.f32.xlu1 %v1294_v31 }
 0x796   : > { %v3626_v47 = vsel %vm1830_vm13, %v3515_v59, %v1169_v20  ;;  %v1214_v8 = vadd.s32 %v1213_v19, %v1211_v46  ;;  %v1195_v54 = vpop.xlane.xlu0 %1194  ;;  %vm1275_vm15 = vcmp.eq.s32.totalorder %v2949_v34, %v1169_v20  ;;  %v1272_v59 = vcvt.f32.s32 %v1266_v14 }
 0x797   : > { %v1196_v1 = vcvt.f32.s32 %v1195_v54  ;;  %v3630_v35 = vsel %vm1275_vm15, 3e+38, %v3519_v24  ;;  %v1243_v24 = vshll.u32 %v1242_v33, 16  ;;  %v1228_v14 = vshll.u32 %v1227_v22, 16 }
 0x798   : > { %v3635_v29 = vsel %vm1830_vm13, %v3523_v3, %v1214_v8  ;;  %v1291_v53 = vsel %vm586_vm2, %v3630_v35, inf  ;;  %vm1278_vm4 = vcmp.eq.s32.totalorder %v2949_v34, %v1214_v8  ;;  %v1257_v3 = vcvt.f32.s32 %v3611_v41 }
 0x799   : > { %v1199_v38 = vadd.s32 %v1198_v42, %v1196_v1  ;;  %v1240_v62 = vpop.xlane.xlu1 %1239  ;;  %1292 = vmin.xlane.f32.xlu0 %v1291_v53  ;;  %v3641_v30 = vsel %vm1278_vm4, 3e+38, %v3529_v55  ;;  %v1273_v57 = vshll.u32 %v1272_v59, 16 }
 0x79a   : > { %v1241_v50 = vcvt.f32.s32 %v1240_v62  ;;  %v1300_v32 = vsel %vm586_vm2, %v3641_v30, inf  ;;  %v1258_v13 = vshll.u32 %v1257_v3, 16 }
 0x79b   : > { %v3648_v27 = vsel %vm1830_vm13, %v3536_v7, %v1199_v38  ;;  %v1225_v61 = vpop.xlane.xlu0 %1224  ;;  %1301 = vmin.xlane.f32.xlu1 %v1300_v32  ;;  %vm1277_vm5 = vcmp.eq.s32.totalorder %v2949_v34, %v1199_v38 }
 0x79c   : > { %v1244_v63 = vadd.s32 %v1243_v24, %v1241_v50  ;;  %v1226_v36 = vcvt.f32.s32 %v1225_v61  ;;  %v3652_v55 = vsel %vm1277_vm5, 3e+38, %v3540_v23 }
 0x79d   : > { %v1270_v5 = vpop.xlane.xlu1 %1269  ;;  %v1297_v43 = vsel %vm586_vm2, %v3652_v55, inf }
 0x79e   : > { %v3658_v41 = vsel %vm1830_vm13, %v3544_v45, %v1244_v63  ;;  %v1229_v7 = vadd.s32 %v1228_v14, %v1226_v36  ;;  %v1271_v52 = vcvt.f32.s32 %v1270_v5  ;;  %1298 = vmin.xlane.f32.xlu0 %v1297_v43  ;;  %vm1280_vm6 = vcmp.eq.s32.totalorder %v2949_v34, %v1244_v63 }
 0x79f   : > { %v1255_v51 = vpop.xlane.xlu0 %1254  ;;  %v3662_v26 = vsel %vm1280_vm6, 3e+38, %v3554_v21 }
 0x7a0   : > { %v3666_v23 = vsel %vm1830_vm13, %v3551_v25, %v1229_v7  ;;  %v1274_v0 = vadd.s32 %v1273_v57, %v1271_v52  ;;  %v1256_v15 = vcvt.f32.s32 %v1255_v51  ;;  %v1306_v45 = vsel %vm586_vm2, %v3662_v26, inf }
 0x7a1   : > { %1307 = vmin.xlane.f32.xlu1 %v1306_v45  ;;  %vm1279_vm7 = vcmp.eq.s32.totalorder %v2949_v34, %v1229_v7 }
 0x7a2   : > { %v3673_v16 = vsel %vm1830_vm13, %v3561_v9, %v1274_v0  ;;  %v1259_v28 = vadd.s32 %v1258_v13, %v1256_v15  ;;  %v3676_v21 = vsel %vm1279_vm7, 3e+38, %v3564_v44  ;;  %vm1282_vm8 = vcmp.eq.s32.totalorder %v2949_v34, %v1274_v0 }
 0x7a3   : > { %v1303_v25 = vsel %vm586_vm2, %v3676_v21, inf  ;;  %v3682_v10 = vsel %vm1282_vm8, 3e+38, %v3570_v11  ;;  %v2752_v11 = vpop.f32.mrf.mxu1 }
 0x7a4   : > { %v3686_v56 = vsel %vm1830_vm13, %v3574_v49, %v1259_v28  ;;  %1304 = vmin.xlane.f32.xlu0 %v1303_v25  ;;  %v1312_v9 = vsel %vm586_vm2, %v3682_v10, inf  ;;  %vm1281_vm9 = vcmp.eq.s32.totalorder %v2949_v34, %v1259_v28 }
 0x7a5   : > { %1313 = vmin.xlane.f32.xlu1 %v1312_v9  ;;  %v3692_v44 = vsel %vm1281_vm9, 3e+38, %v3580_v18  ;;  %v1996_v60 = vpop.f32.mrf.mxu1 }
 0x7a6   : > { %v1309_v58 = vsel %vm586_vm2, %v3692_v44, inf }
 0x7a7   : > { %v2755_v31 = vpop.f32.mrf.mxu1 }
 0x7a8   : > { %1310 = vmin.xlane.f32.xlu0 %v1309_v58 }
 0x7a9   : > { %v2006_v49 = vpop.f32.mrf.mxu1 }
 0x7b6   : > { %2198 = vrot.lane.b32.xlu1 %v2752_v11, %s2852_s11 }
 0x7ba   : > { %2200 = vrot.lane.b32.xlu1 %v2006_v49, %s2852_s11 }
 0x7be   : > { %2196 = vrot.lane.b32.xlu0 %v1996_v60, %s2852_s11  ;;  %2202 = vrot.lane.b32.xlu1 %v2755_v31, %s2852_s11 }
 0x81e   : > { %v1296_v19 = vpop.xlane.xlu1 %1295 }
 0x81f   : > { %vm1316_vm10 = vcmp.eq.f32.partialorder %v3620_v6, %v1296_v19  ;;  %v2758_v19 = vpop.f32.mrf.mxu1 }
 0x820   : > { %v1324_v18 = vsel %vm1316_vm10, %v2949_v34, 64 }
 0x821   : > { %v3703_v20 = vsel %vm586_vm2, %v1324_v18, 2147483647  ;;  %v2016_v18 = vpop.f32.mrf.mxu1 }
 0x822   : > { %v1348_v46 = vshra.s32 %v3703_v20, 16  ;;  %v1293_v33 = vpop.xlane.xlu0 %1292 }
 0x823   : > { %vm1315_vm11 = vcmp.eq.f32.partialorder %v3630_v35, %v1293_v33  ;;  %v2780_v33 = vpop.f32.mrf.mxu0 }
 0x824   : > { %v3707_v8 = vcvt.s32.f32 %v1348_v46  ;;  %v1323_v54 = vsel %vm1315_vm11, %v2949_v34, 64  ;;  %v1302_v42 = vpop.xlane.xlu1 %1301  ;;  %v2761_v46 = vpop.f32.mrf.mxu1 }
 0x825   : > { %v3711_v1 = vsel %vm586_vm2, %v1323_v54, 2147483647  ;;  %vm1318_vm12 = vcmp.eq.f32.partialorder %v3641_v30, %v1302_v42  ;;  %v2149_v42 = vpop.f32.mrf.mxu0 }
 0x826   : > { %1351 = vmin.xlane.f32.xlu1 %v3707_v8  ;;  %v1326_v22 = vsel %vm1318_vm12, %v2949_v34, 64  ;;  %v1333_v53 = vshra.s32 %v3711_v1, 16  ;;  %v2026_v54 = vpop.f32.mrf.mxu1 }
 0x827   : > { %v3718_v59 = vsel %vm586_vm2, %v1326_v22, 2147483647  ;;  %v1299_v38 = vpop.xlane.xlu0 %1298 }
 0x828   : > { %vm1317_vm13 = vcmp.eq.f32.partialorder %v3652_v55, %v1299_v38  ;;  %v3721_v62 = vcvt.s32.f32 %v1333_v53  ;;  %v1378_v24 = vshra.s32 %v3718_v59, 16 }
 0x829   : > { %v1325_v50 = vsel %vm1317_vm13, %v2949_v34, 64 }
 0x82a   : > { %v3726_v32 = vsel %vm586_vm2, %v1325_v50, 2147483647  ;;  %v1308_v3 = vpop.xlane.xlu1 %1307  ;;  %1336 = vmin.xlane.f32.xlu0 %v3721_v62  ;;  %v3729_v61 = vcvt.s32.f32 %v1378_v24  ;;  %v1347_v24 = vand.u32 65535, %v3703_v20 }
 0x82b   : > { %vm1320_vm14 = vcmp.eq.f32.partialorder %v3662_v26, %v1308_v3  ;;  %v1363_v14 = vshra.s32 %v3726_v32, 16  ;;  %v1362_v20 = vand.u32 65535, %v3726_v32 }
 0x82c   : > { %v1328_v63 = vsel %vm1320_vm14, %v2949_v34, 64  ;;  %1381 = vmin.xlane.f32.xlu1 %v3729_v61  ;;  %v1349_v3 = vcvt.s32.f32 %v1347_v24  ;;  %vm2260_vm14 = vcmask 130048  }
 0x82d   : > { %v3736_v36 = vsel %vm586_vm2, %v1328_v63, 2147483647  ;;  %v1305_v57 = vpop.xlane.xlu0 %1304  ;;  %v3738_v5 = vcvt.s32.f32 %v1363_v14  ;;  %v1332_v63 = vand.u32 65535, %v3711_v1 }
 0x82e   : > { %vm1319_vm15 = vcmp.eq.f32.partialorder %v3676_v21, %v1305_v57  ;;  %v1314_v43 = vpop.xlane.xlu1 %1313  ;;  %v1408_v7 = vshra.s32 %v3736_v36, 16  ;;  %v1407_v1 = vand.u32 65535, %v3736_v36 }
 0x82f   : > { %v1327_v52 = vsel %vm1319_vm15, %v2949_v34, 64  ;;  %vm1322_vm4 = vcmp.eq.f32.partialorder %v3682_v10, %v1314_v43  ;;  %1366 = vmin.xlane.f32.xlu0 %v3738_v5  ;;  %v1377_v43 = vand.u32 65535, %v3718_v59  ;;  %vm1839_vm15 = vcmask 39936  }
 0x830   : > { %v3746_v13 = vsel %vm586_vm2, %v1327_v52, 2147483647  ;;  %v1330_v51 = vsel %vm1322_vm4, %v2949_v34, 64  ;;  %v3749_v0 = vcvt.s32.f32 %v1408_v7  ;;  %v1334_v52 = vcvt.s32.f32 %v1332_v63 }
 0x831   : > { %v3752_v15 = vsel %vm586_vm2, %v1330_v51, 2147483647  ;;  %v1311_v45 = vpop.xlane.xlu0 %1310  ;;  %v1393_v28 = vshra.s32 %v3746_v13, 16  ;;  %v1392_v32 = vand.u32 65535, %v3746_v13 }
 0x832   : > { %vm1321_vm5 = vcmp.eq.f32.partialorder %v3692_v44, %v1311_v45  ;;  %1411 = vmin.xlane.f32.xlu1 %v3749_v0  ;;  %v1438_v25 = vshra.s32 %v3752_v15, 16  ;;  %v3778_v22 = vpop.permute.xlu1 %2198 }
 0x833   : > { %v1329_v9 = vsel %vm1321_vm5, %v2949_v34, 64  ;;  %v3759_v58 = vcvt.s32.f32 %v1393_v28  ;;  %v1379_v28 = vcvt.s32.f32 %v1377_v43 }
 0x834   : > { %v3762_v11 = vsel %vm586_vm2, %v1329_v9, 2147483647  ;;  %v3764_v60 = vcvt.s32.f32 %v1438_v25  ;;  %v1364_v25 = vcvt.s32.f32 %v1362_v20 }
 0x835   : > { %1396 = vmin.xlane.f32.xlu0 %v3759_v58  ;;  %v1423_v31 = vshra.s32 %v3762_v11, 16  ;;  %v3787_v14 = vpop.permute.xlu0 %2196 }
 0x836   : > { %1441 = vmin.xlane.f32.xlu1 %v3764_v60  ;;  %v3780_v53 = vpop.permute.xlu1 %2200 }
 0x837   : > { %v3769_v49 = vcvt.s32.f32 %v1423_v31  ;;  %v1409_v31 = vcvt.s32.f32 %v1407_v1 }
 0x839   : > { %1426 = vmin.xlane.f32.xlu0 %v3769_v49 }
 0x83a   : > { %v3782_v38 = vpop.permute.xlu1 %2202 }
 0x847   : > { %2206 = vrot.lane.b32.xlu1 %v2758_v19, %s2852_s11  ;;  %v1437_v19 = vand.u32 65535, %v3752_v15 }
 0x849   : > { %v1439_v13 = vcvt.s32.f32 %v1437_v19 }
 0x84b   : > { %2210 = vrot.lane.b32.xlu1 %v2761_v46, %s2852_s11  ;;  %v1422_v46 = vand.u32 65535, %v3762_v11 }
 0x84f   : > { %2204 = vrot.lane.b32.xlu0 %v2016_v18, %s2852_s11  ;;  %2230 = vrot.lane.b32.xlu1 %v2780_v33, %s2853_s12  ;;  %v1394_v18 = vcvt.s32.f32 %v1392_v32 }
 0x853   : > { %2208 = vrot.lane.b32.xlu0 %v2026_v54, %s2852_s11  ;;  %v1424_v54 = vcvt.s32.f32 %v1422_v46 }
 0x857   : > { %2228 = vrot.lane.b32.xlu0 %v2149_v42, %s2853_s12  ;;  %v2783_v42 = vpop.f32.mrf.mxu0 }
 0x859   : > { %v2159_v24 = vpop.f32.mrf.mxu0 }
 0x8af   : > { %v3785_v50 = vpop.xlane.xlu1 %1351 }
 0x8b0   : > { %vm1353_vm6 = vcmp.eq.f32.partialorder %v3707_v8, %v3785_v50  ;;  %v1358_v32 = vcvt.f32.s32 %v3785_v50 }
 0x8b1   : > { %v1354_v57 = vsel %vm1353_vm6, %v1349_v3, inf  ;;  %v2786_v3 = vpop.f32.mrf.mxu0 }
 0x8b2   : > { %1355 = vmin.xlane.f32.xlu1 %v1354_v57  ;;  %v1359_v19 = vshll.u32 %v1358_v32, 16 }
 0x8b3   : > { %v3793_v7 = vpop.xlane.xlu0 %1336  ;;  %v2169_v63 = vpop.f32.mrf.mxu0 }
 0x8b4   : > { %vm1338_vm7 = vcmp.eq.f32.partialorder %v3721_v62, %v3793_v7 }
 0x8b5   : > { %v3798_v51 = vpop.xlane.xlu1 %1381  ;;  %v1339_v45 = vsel %vm1338_vm7, %v1334_v52, inf  ;;  %v2789_v43 = vpop.f32.mrf.mxu0  ;;  %v2819_v52 = vld [vmem:[%s2914_s26 + $0x8] sm:$0xff] }
 0x8b6   : > { %1340 = vmin.xlane.f32.xlu0 %v1339_v45  ;;  %vm1383_vm8 = vcmp.eq.f32.partialorder %v3729_v61, %v3798_v51  ;;  %v2253_v20 = vsel %vm356_vm0, %v2819_v52, %v3778_v22 }
 0x8b7   : > { %v1384_v8 = vsel %vm1383_vm8, %v1379_v28, inf }
 0x8b8   : > { %v3803_v59 = vpop.xlane.xlu0 %1366  ;;  %1385 = vmin.xlane.f32.xlu1 %v1384_v8  ;;  %v2179_v8 = vpop.f32.mrf.mxu0 }
 0x8b9   : > { %vm1368_vm9 = vcmp.eq.f32.partialorder %v3738_v5, %v3803_v59  ;;  %v1373_v50 = vcvt.f32.s32 %v3803_v59 }
 0x8ba   : > { %v1369_v62 = vsel %vm1368_vm9, %v1364_v25, inf  ;;  %v2820_v25 = vld [vmem:[%s2914_s26] sm:$0xff] }
 0x8bb   : > { %v3808_v9 = vpop.xlane.xlu1 %1411  ;;  %1370 = vmin.xlane.f32.xlu0 %v1369_v62  ;;  %v2252_v62 = vsel %vm356_vm0, %v2820_v25, %v3787_v14 }
 0x8bc   : > { %vm1413_vm10 = vcmp.eq.f32.partialorder %v3749_v0, %v3808_v9 }
 0x8bd   : > { %v1414_v61 = vsel %vm1413_vm10, %v1409_v31, inf }
 0x8be   : > { %v3813_v36 = vpop.xlane.xlu0 %1396  ;;  %1415 = vmin.xlane.f32.xlu1 %v1414_v61 }
 0x8bf   : > { %v3816_v5 = vpop.xlane.xlu1 %1441  ;;  %vm1398_vm11 = vcmp.eq.f32.partialorder %v3759_v58, %v3813_v36 }
 0x8c0   : > { %v1399_v33 = vsel %vm1398_vm11, %v1394_v18, inf  ;;  %vm1443_vm12 = vcmp.eq.f32.partialorder %v3764_v60, %v3816_v5  ;;  %v1343_v18 = vcvt.f32.s32 %v3793_v7  ;;  %v1418_v7 = vcvt.f32.s32 %v3808_v9 }
 0x8c1   : > { %1400 = vmin.xlane.f32.xlu0 %v1399_v33  ;;  %v1444_v15 = vsel %vm1443_vm12, %v1439_v13, inf  ;;  %v1388_v13 = vcvt.f32.s32 %v3798_v51  ;;  %v1448_v25 = vcvt.f32.s32 %v3816_v5 }
 0x8c2   : > { %v3822_v0 = vpop.xlane.xlu0 %1426  ;;  %1445 = vmin.xlane.f32.xlu1 %v1444_v15  ;;  %v1344_v15 = vshll.u32 %v1343_v18, 16 }
 0x8c3   : > { %vm1428_vm13 = vcmp.eq.f32.partialorder %v3769_v49, %v3822_v0  ;;  %v3826_v58 = vpop.permute.xlu1 %2206 }
 0x8c4   : > { %v1429_v11 = vsel %vm1428_vm13, %v1424_v54, inf }
 0x8c5   : > { %1430 = vmin.xlane.f32.xlu0 %v1429_v11 }
 0x8c6   : > { %v3831_v57 = vpop.permute.xlu0 %2204 }
 0x8c7   : > { %v3829_v60 = vpop.permute.xlu1 %2210 }
 0x8ca   : > { %v3839_v45 = vpop.permute.xlu0 %2208 }
 0x8cb   : > { %v2231_v49 = vpop.permute.xlu1 %2230 }
 0x8cc   : > { %v3842_v28 = vsel %vm2260_vm14, %v2253_v20, %v2231_v49  ;;  %v1403_v20 = vcvt.f32.s32 %v3813_v36  ;;  %v1433_v36 = vcvt.f32.s32 %v3822_v0 }
 0x8ce   : > { %v2229_v1 = vpop.permute.xlu0 %2228 }
 0x8cf   : > { %v3852_v22 = vsel %vm2260_vm14, %v2252_v62, %v2229_v1  ;;  %v1419_v1 = vshll.u32 %v1418_v7, 16  ;;  %v2821_v7 = vld [vmem:[%s2914_s26 + $0x10] sm:$0xff] }
 0x8d3   : > { %2234 = vrot.lane.b32.xlu1 %v2783_v42, %s2853_s12  ;;  %v1389_v42 = vshll.u32 %v1388_v13, 16  ;;  %v1449_v13 = vshll.u32 %v1448_v25, 16 }
 0x8d7   : > { %2238 = vrot.lane.b32.xlu1 %v2786_v3, %s2853_s12 }
 0x8db   : > { %2232 = vrot.lane.b32.xlu0 %v2159_v24, %s2853_s12  ;;  %2242 = vrot.lane.b32.xlu1 %v2789_v43, %s2853_s12  ;;  %v1374_v43 = vshll.u32 %v1373_v50, 16  ;;  %v1434_v50 = vshll.u32 %v1433_v36, 16 }
 0x8df   : > { %2236 = vrot.lane.b32.xlu0 %v2169_v63, %s2853_s12  ;;  %2279 = vrot.lane.b32.xlu1 %v3842_v28, %s2854_s13 }
 0x8e3   : > { %2240 = vrot.lane.b32.xlu0 %v2179_v8, %s2853_s12 }
 0x8e7   : > { %2277 = vrot.lane.b32.xlu0 %v3852_v22, %s2854_s13 }
 0x93b   : > { %v1356_v31 = vpop.xlane.xlu1 %1355 }
 0x93c   : > { %v1357_v61 = vcvt.f32.s32 %v1356_v31 }
 0x93e   : > { %v3858_v46 = vadd.s32 %v1359_v19, %v1357_v61  ;;  %v1404_v19 = vshll.u32 %v1403_v20, 16  ;;  %v2822_v20 = vld [vmem:[%s2914_s26 + $0x20] sm:$0xff] }
 0x93f   : > { %v1341_v33 = vpop.xlane.xlu0 %1340 }
 0x940   : > { %v3864_v14 = vsel %vm1839_vm15, %v3616_v12, %v3858_v46  ;;  %v1342_v54 = vcvt.f32.s32 %v1341_v33  ;;  %vm1452_vm8 = vcmp.eq.s32.totalorder %v2949_v34, %v3858_v46 }
 0x941   : > { %v1386_v11 = vpop.xlane.xlu1 %1385 }
 0x942   : > { %v1345_v24 = vadd.s32 %v1344_v15, %v1342_v54  ;;  %v1387_v3 = vcvt.f32.s32 %v1386_v11 }
 0x944   : > { %vm1451_vm4 = vcmp.eq.s32.totalorder %v2949_v34, %v1345_v24  ;;  %v3871_v51 = vsel %vm1839_vm15, %v3626_v47, %v1345_v24  ;;  %v3873_v63 = vadd.s32 %v1389_v42, %v1387_v3  ;;  %v1371_v12 = vpop.xlane.xlu0 %1370 }
 0x945   : > { %v1372_v49 = vcvt.f32.s32 %v1371_v12  ;;  %v3876_v52 = vsel %vm1451_vm4, 3e+38, %v3630_v35  ;;  %v2254_v12 = vsel %vm356_vm0, %v2821_v7, %v3780_v53 }
 0x946   : > { %v3881_v59 = vsel %vm1839_vm15, %v3635_v29, %v3873_v63  ;;  %v1467_v9 = vsel %vm586_vm2, %v3876_v52, inf  ;;  %vm1454_vm9 = vcmp.eq.s32.totalorder %v2949_v34, %v3873_v63 }
 0x947   : > { %v1375_v47 = vadd.s32 %v1374_v43, %v1372_v49  ;;  %v1416_v8 = vpop.xlane.xlu1 %1415  ;;  %1468 = vmin.xlane.f32.xlu0 %v1467_v9 }
 0x948   : > { %v1417_v62 = vcvt.f32.s32 %v1416_v8 }
 0x949   : > { %vm1453_vm5 = vcmp.eq.s32.totalorder %v2949_v34, %v1375_v47  ;;  %v3890_v35 = vsel %vm1839_vm15, %v3648_v27, %v1375_v47 }
 0x94a   : > { %v1420_v29 = vadd.s32 %v1419_v1, %v1417_v62  ;;  %v1401_v32 = vpop.xlane.xlu0 %1400  ;;  %v3893_v31 = vsel %vm1453_vm5, 3e+38, %v3652_v55  ;;  %v2823_v1 = vld [vmem:[%s2914_s26 + $0x30] sm:$0xff] }
 0x94b   : > { %v1402_v61 = vcvt.f32.s32 %v1401_v32  ;;  %v1446_v18 = vpop.xlane.xlu1 %1445  ;;  %v1473_v5 = vsel %vm586_vm2, %v3893_v31, inf  ;;  %v3955_v32 = vsel %vm1452_vm8, 3e+38, %v3620_v6 }
 0x94c   : > { %v3900_v33 = vsel %vm1839_vm15, %v3658_v41, %v1420_v29  ;;  %v1447_v27 = vcvt.f32.s32 %v1446_v18  ;;  %1474 = vmin.xlane.f32.xlu0 %v1473_v5  ;;  %vm1456_vm10 = vcmp.eq.s32.totalorder %v2949_v34, %v1420_v29  ;;  %v2824_v5 = vld [vmem:[%s2914_s26 + $0x18] sm:$0xff] }
 0x94d   : > { %v1405_v15 = vadd.s32 %v1404_v19, %v1402_v61  ;;  %v3962_v19 = vsel %vm1454_vm9, 3e+38, %v3641_v30  ;;  %v3968_v6 = vsel %vm1456_vm10, 3e+38, %v3662_v26  ;;  %v2255_v26 = vsel %vm356_vm0, %v2824_v5, %v3782_v38 }
 0x94e   : > { %v1450_v54 = vadd.s32 %v1449_v13, %v1447_v27  ;;  %v1431_v55 = vpop.xlane.xlu0 %1430  ;;  %v1476_v46 = vsel %vm586_vm2, %v3962_v19, inf  ;;  %v1482_v63 = vsel %vm586_vm2, %v3968_v6, inf  ;;  %v2825_v27 = vld [vmem:[%s2914_s26 + $0x28] sm:$0xff] }
 0x94f   : > { %vm1455_vm6 = vcmp.eq.s32.totalorder %v2949_v34, %v1405_v15  ;;  %v3905_v0 = vsel %vm1839_vm15, %v3666_v23, %v1405_v15  ;;  %v1432_v11 = vcvt.f32.s32 %v1431_v55  ;;  %v2235_v36 = vpop.permute.xlu1 %2234  ;;  %v2826_v55 = vld [vmem:[%s2914_s26 + $0x38] sm:$0xff] }
 0x950   : > { %v3909_v42 = vsel %vm1839_vm15, %v3673_v16, %v1450_v54  ;;  %v3912_v41 = vsel %vm1455_vm6, 3e+38, %v3676_v21  ;;  %vm1458_vm11 = vcmp.eq.s32.totalorder %v2949_v34, %v1450_v54  ;;  %v3982_v13 = vsel %vm2260_vm14, %v2255_v26, %v2235_v36 }
 0x951   : > { %v1435_v24 = vadd.s32 %v1434_v50, %v1432_v11  ;;  %v1479_v3 = vsel %vm586_vm2, %v3912_v41, inf  ;;  %v3974_v30 = vsel %vm1458_vm11, 3e+38, %v3682_v10  ;;  %v2257_v10 = vsel %vm356_vm0, %v2825_v27, %v3826_v58 }
 0x952   : > { %1480 = vmin.xlane.f32.xlu0 %v1479_v3  ;;  %v2233_v23 = vpop.permute.xlu0 %2232  ;;  %v1488_v29 = vsel %vm586_vm2, %v3974_v30, inf  ;;  %v2259_v38 = vsel %vm356_vm0, %v2826_v55, %v3829_v60 }
 0x953   : > { %vm1457_vm7 = vcmp.eq.s32.totalorder %v2949_v34, %v1435_v24  ;;  %v3922_v16 = vsel %vm1839_vm15, %v3686_v56, %v1435_v24  ;;  %v3925_v21 = vsel %vm2260_vm14, %v2254_v12, %v2233_v23  ;;  %v2256_v56 = vsel %vm356_vm0, %v2822_v20, %v3831_v57  ;;  %v2239_v61 = vpop.permute.xlu1 %2238 }
 0x954   : > { %2281 = vrot.lane.b32.xlu1 %v3925_v21, %s2854_s13  ;;  %v3930_v43 = vsel %vm1457_vm7, 3e+38, %v3692_v44  ;;  %v2258_v44 = vsel %vm356_vm0, %v2823_v1, %v3839_v45  ;;  %v1470_v45 = vsel %vm586_vm2, %v3955_v32, inf  ;;  %v3990_v15 = vsel %vm2260_vm14, %v2257_v10, %v2239_v61 }
 0x955   : > { %v1485_v53 = vsel %vm586_vm2, %v3930_v43, inf }
 0x956   : > { %1486 = vmin.xlane.f32.xlu0 %v1485_v53  ;;  %v2237_v49 = vpop.permute.xlu0 %2236 }
 0x957   : > { %v3938_v47 = vsel %vm2260_vm14, %v2256_v56, %v2237_v49  ;;  %v2243_v18 = vpop.permute.xlu1 %2242 }
 0x958   : > { %v3999_v11 = vsel %vm2260_vm14, %v2259_v38, %v2243_v18 }
 0x95a   : > { %v2241_v9 = vpop.permute.xlu0 %2240 }
 0x95b   : > { %v3947_v62 = vsel %vm2260_vm14, %v2258_v44, %v2241_v9  ;;  %v2280_v54 = vpop.permute.xlu1 %2279 }
 0x95c   : > { %v2302_v50 = vsub.f32 %v3842_v28, %v2280_v54 }
 0x95e   : > { %v2278_v8 = vpop.permute.xlu0 %2277  ;;  %v2310_v58 = vmul.f32 %v2302_v50, %v2302_v50 }
 0x95f   : > { %v2301_v25 = vsub.f32 %v3852_v22, %v2278_v8 }
 0x961   : > { %v2309_v57 = vmul.f32 %v2301_v25, %v2301_v25 }
 0x96c   : > { %2285 = vrot.lane.b32.xlu0 %v3938_v47, %s2854_s13 }
 0x970   : > { %2289 = vrot.lane.b32.xlu0 %v3947_v62, %s2854_s13 }
 0x974   : > { %2325 = vrot.lane.b32.xlu0 %v2309_v57, %s2854_s13 }
 0x978   : > { %1471 = vmin.xlane.f32.xlu1 %v1470_v45 }
 0x97c   : > { %1477 = vmin.xlane.f32.xlu1 %v1476_v46 }
 0x980   : > { %1483 = vmin.xlane.f32.xlu1 %v1482_v63 }
 0x984   : > { %1489 = vmin.xlane.f32.xlu1 %v1488_v29 }
 0x995   : > { %2283 = vrot.lane.b32.xlu1 %v3982_v13, %s2854_s13 }
 0x999   : > { %2287 = vrot.lane.b32.xlu1 %v3990_v15, %s2854_s13 }
 0x99d   : > { %2291 = vrot.lane.b32.xlu1 %v3999_v11, %s2854_s13 }
 0x9a1   : > { %2327 = vrot.lane.b32.xlu1 %v2310_v58, %s2854_s13 }
 0x9c6   : > { %v2282_v5 = vpop.permute.xlu1 %2281 }
 0x9d0   : > { %v1469_v24 = vpop.xlane.xlu0 %1468 }
 0x9d1   : > { %vm1491_vm12 = vcmp.eq.f32.partialorder %v3876_v52, %v1469_v24 }
 0x9d2   : > { %v1499_v3 = vsel %vm1491_vm12, %v2949_v34, 64 }
 0x9d3   : > { %v4007_v7 = vsel %vm586_vm2, %v1499_v3, 2147483647 }
 0x9d4   : > { %v1509_v60 = vshra.s32 %v4007_v7, 16 }
 0x9d5   : > { %v1475_v12 = vpop.xlane.xlu0 %1474 }
 0x9d6   : > { %vm1493_vm13 = vcmp.eq.f32.partialorder %v3893_v31, %v1475_v12  ;;  %v4011_v23 = vcvt.s32.f32 %v1509_v60 }
 0x9d7   : > { %v1501_v53 = vsel %vm1493_vm13, %v2949_v34, 64 }
 0x9d8   : > { %v4015_v49 = vsel %vm586_vm2, %v1501_v53, 2147483647  ;;  %1512 = vmin.xlane.f32.xlu0 %v4011_v23 }
 0x9d9   : > { %v1539_v9 = vshra.s32 %v4015_v49, 16 }
 0x9db   : > { %v1481_v20 = vpop.xlane.xlu0 %1480  ;;  %v4019_v56 = vcvt.s32.f32 %v1539_v9 }
 0x9dc   : > { %vm1495_vm14 = vcmp.eq.f32.partialorder %v3912_v41, %v1481_v20 }
 0x9dd   : > { %v1503_v8 = vsel %vm1495_vm14, %v2949_v34, 64  ;;  %1542 = vmin.xlane.f32.xlu0 %v4019_v56 }
 0x9de   : > { %v4025_v1 = vsel %vm586_vm2, %v1503_v8, 2147483647 }
 0x9df   : > { %v1569_v44 = vshra.s32 %v4025_v1, 16  ;;  %v1487_v25 = vpop.xlane.xlu0 %1486 }
 0x9e0   : > { %vm1497_vm15 = vcmp.eq.f32.partialorder %v3930_v43, %v1487_v25 }
 0x9e1   : > { %v1505_v57 = vsel %vm1497_vm15, %v2949_v34, 64  ;;  %v4030_v45 = vcvt.s32.f32 %v1569_v44 }
 0x9e2   : > { %v4033_v46 = vsel %vm586_vm2, %v1505_v57, 2147483647 }
 0x9e3   : > { %v1599_v63 = vshra.s32 %v4033_v46, 16  ;;  %1572 = vmin.xlane.f32.xlu0 %v4030_v45  ;;  %v2286_v36 = vpop.permute.xlu0 %2285 }
 0x9e4   : > { %v2305_v61 = vsub.f32 %v3938_v47, %v2286_v36 }
 0x9e5   : > { %v4037_v29 = vcvt.s32.f32 %v1599_v63 }
 0x9e6   : > { %v2313_v18 = vmul.f32 %v2305_v61, %v2305_v61  ;;  %v2303_v61 = vsub.f32 %v3925_v21, %v2282_v5 }
 0x9e7   : > { %1602 = vmin.xlane.f32.xlu0 %v4037_v29 }
 0x9fd   : > { %2333 = vrot.lane.b32.xlu0 %v2313_v18, %s2854_s13  ;;  %v2311_v18 = vmul.f32 %v2303_v61, %v2303_v61 }
 0xa01   : > { %v1472_v26 = vpop.xlane.xlu1 %1471 }
 0xa02   : > { %vm1492_vm4 = vcmp.eq.f32.partialorder %v3955_v32, %v1472_v26 }
 0xa03   : > { %v1500_v27 = vsel %vm1492_vm4, %v2949_v34, 64  ;;  %vm1848_vm4 = vcmask 48128  }
 0xa04   : > { %v1522_v10 = vsel %vm586_vm2, %v1500_v27, 2147483647 }
 0xa05   : > { %v1524_v54 = vshra.s32 %v1522_v10, 16  ;;  %v1478_v55 = vpop.xlane.xlu1 %1477 }
 0xa06   : > { %vm1494_vm5 = vcmp.eq.f32.partialorder %v3962_v19, %v1478_v55 }
 0xa07   : > { %v1502_v38 = vsel %vm1494_vm5, %v2949_v34, 64  ;;  %v1526_v50 = vcvt.s32.f32 %v1524_v54 }
 0xa08   : > { %v1552_v58 = vsel %vm586_vm2, %v1502_v38, 2147483647 }
 0xa09   : > { %v1554_v24 = vshra.s32 %v1552_v58, 16  ;;  %1527 = vmin.xlane.f32.xlu1 %v1526_v50  ;;  %v1484_v3 = vpop.xlane.xlu1 %1483  ;;  %v1553_v61 = vand.u32 65535, %v1552_v58 }
 0xa0a   : > { %vm1496_vm6 = vcmp.eq.f32.partialorder %v3968_v6, %v1484_v3  ;;  %v1508_v3 = vand.u32 65535, %v4007_v7 }
 0xa0b   : > { %v1504_v60 = vsel %vm1496_vm6, %v2949_v34, 64  ;;  %v1556_v12 = vcvt.s32.f32 %v1554_v24  ;;  %v2290_v24 = vpop.permute.xlu0 %2289 }
 0xa0c   : > { %v1582_v53 = vsel %vm586_vm2, %v1504_v60, 2147483647  ;;  %v1510_v5 = vcvt.s32.f32 %v1508_v3  ;;  %v1568_v3 = vand.u32 65535, %v4025_v1 }
 0xa0d   : > { %v1584_v9 = vshra.s32 %v1582_v53, 16  ;;  %1557 = vmin.xlane.f32.xlu1 %v1556_v12  ;;  %v1490_v20 = vpop.xlane.xlu1 %1489 }
 0xa0e   : > { %vm1498_vm7 = vcmp.eq.f32.partialorder %v3974_v30, %v1490_v20 }
 0xa0f   : > { %v1506_v8 = vsel %vm1498_vm7, %v2949_v34, 64  ;;  %v1586_v44 = vcvt.s32.f32 %v1584_v9  ;;  %v2326_v60 = vpop.permute.xlu0 %2325 }
 0xa10   : > { %v1612_v25 = vsel %vm586_vm2, %v1506_v8, 2147483647 }
 0xa11   : > { %v1614_v57 = vshra.s32 %v1612_v25, 16  ;;  %1587 = vmin.xlane.f32.xlu1 %v1586_v44  ;;  %v2284_v36 = vpop.permute.xlu1 %2283 }
 0xa12   : > { %v2304_v26 = vsub.f32 %v3982_v13, %v2284_v36 }
 0xa13   : > { %v1616_v63 = vcvt.s32.f32 %v1614_v57  ;;  %v1523_v57 = vand.u32 65535, %v1522_v10 }
 0xa14   : > { %v2312_v54 = vmul.f32 %v2304_v26, %v2304_v26 }
 0xa15   : > { %1617 = vmin.xlane.f32.xlu1 %v1616_v63  ;;  %v2288_v27 = vpop.permute.xlu1 %2287 }
 0xa16   : > { %v2306_v55 = vsub.f32 %v3990_v15, %v2288_v27  ;;  %v1525_v27 = vcvt.s32.f32 %v1523_v57 }
 0xa18   : > { %v2314_v38 = vmul.f32 %v2306_v55, %v2306_v55  ;;  %v1583_v55 = vand.u32 65535, %v1582_v53 }
 0xa19   : > { %v2292_v8 = vpop.permute.xlu1 %2291 }
 0xa1d   : > { %v2328_v36 = vpop.permute.xlu1 %2327 }
 0xa26   : > { %2329 = vrot.lane.b32.xlu1 %v2311_v18, %s2854_s13 }
 0xa2a   : > { %2331 = vrot.lane.b32.xlu1 %v2312_v54, %s2854_s13  ;;  %v1538_v54 = vand.u32 65535, %v4015_v49 }
 0xa2c   : > { %v1540_v49 = vcvt.s32.f32 %v1538_v54 }
 0xa2e   : > { %2335 = vrot.lane.b32.xlu1 %v2314_v38, %s2854_s13 }
 0xa61   : > { %v4061_v9 = vpop.xlane.xlu0 %1512 }
 0xa62   : > { %vm1514_vm8 = vcmp.eq.f32.partialorder %v4011_v23, %v4061_v9  ;;  %v1555_v23 = vcvt.s32.f32 %v1553_v61 }
 0xa63   : > { %v1515_v20 = vsel %vm1514_vm8, %v1510_v5, inf }
 0xa64   : > { %1516 = vmin.xlane.f32.xlu0 %v1515_v20  ;;  %v1585_v20 = vcvt.s32.f32 %v1583_v55  ;;  %v2307_v55 = vsub.f32 %v3947_v62, %v2290_v24 }
 0xa66   : > { %v4065_v18 = vpop.xlane.xlu0 %1542 }
 0xa67   : > { %vm1544_vm11 = vcmp.eq.f32.partialorder %v4019_v56, %v4065_v18 }
 0xa68   : > { %v1545_v57 = vsel %vm1544_vm11, %v1540_v49, inf }
 0xa6c   : > { %v4074_v10 = vpop.xlane.xlu0 %1572 }
 0xa6d   : > { %vm1574_vm13 = vcmp.eq.f32.partialorder %v4030_v45, %v4074_v10 }
 0xa70   : > { %v4085_v56 = vpop.xlane.xlu0 %1602 }
 0xa71   : > { %vm1604_vm15 = vcmp.eq.f32.partialorder %v4037_v29, %v4085_v56  ;;  %v2349_v29 = vsel %vm356_vm0, %v2326_v60, 0.0 }
 0xa74   : > { %v2334_v24 = vpop.permute.xlu0 %2333 }
 0xa92   : > { %v4067_v26 = vpop.xlane.xlu1 %1527 }
 0xa93   : > { %vm1529_vm9 = vcmp.eq.f32.partialorder %v1526_v50, %v4067_v26  ;;  %v1613_v50 = vand.u32 65535, %v1612_v25  ;;  %v1570_v25 = vcvt.s32.f32 %v1568_v3  ;;  %v2352_v3 = vsel %vm356_vm0, %v2328_v36, 0.0 }
 0xa94   : > { %v1530_v7 = vsel %vm1529_vm9, %v1525_v27, inf  ;;  %v1519_v36 = vcvt.f32.s32 %v4061_v9 }
 0xa95   : > { %1531 = vmin.xlane.f32.xlu1 %v1530_v7  ;;  %v1615_v1 = vcvt.s32.f32 %v1613_v50  ;;  %v1575_v7 = vsel %vm1574_vm13, %v1570_v25, inf }
 0xa96   : > { %v4071_v38 = vpop.xlane.xlu1 %1557 }
 0xa97   : > { %vm1559_vm10 = vcmp.eq.f32.partialorder %v1556_v12, %v4071_v38  ;;  %v1598_v12 = vand.u32 65535, %v4033_v46  ;;  %v2308_v46 = vsub.f32 %v3999_v11, %v2292_v8 }
 0xa98   : > { %v1560_v58 = vsel %vm1559_vm10, %v1555_v23, inf  ;;  %v2315_v23 = vmul.f32 %v2307_v55, %v2307_v55  ;;  %v1549_v55 = vcvt.f32.s32 %v4065_v18 }
 0xa99   : > { %1561 = vmin.xlane.f32.xlu0 %v1560_v58  ;;  %v1600_v45 = vcvt.s32.f32 %v1598_v12  ;;  %v2316_v54 = vmul.f32 %v2308_v46, %v2308_v46  ;;  %v1520_v12 = vshll.u32 %v1519_v36, 16  ;;  %v1609_v36 = vcvt.f32.s32 %v4085_v56 }
 0xa9a   : > { %v4079_v5 = vpop.xlane.xlu1 %1587 }
 0xa9b   : > { %vm1589_vm12 = vcmp.eq.f32.partialorder %v1586_v44, %v4079_v5  ;;  %v1605_v44 = vsel %vm1604_vm15, %v1600_v45, inf }
 0xa9c   : > { %v1590_v53 = vsel %vm1589_vm12, %v1585_v20, inf }
 0xa9d   : > { %1591 = vmin.xlane.f32.xlu1 %v1590_v53  ;;  %1546 = vmin.xlane.f32.xlu0 %v1545_v57  ;;  %v2361_v53 = vsel %vm356_vm0, %v2334_v24, 0.0 }
 0xa9e   : > { %v4087_v61 = vpop.xlane.xlu1 %1617 }
 0xa9f   : > { %vm1619_vm14 = vcmp.eq.f32.partialorder %v1616_v63, %v4087_v61 }
 0xaa0   : > { %v1620_v27 = vsel %vm1619_vm14, %v1615_v1, inf }
 0xaa1   : > { %1621 = vmin.xlane.f32.xlu1 %v1620_v27  ;;  %1576 = vmin.xlane.f32.xlu0 %v1575_v7  ;;  %v1534_v27 = vcvt.f32.s32 %v4067_v26  ;;  %v1579_v26 = vcvt.f32.s32 %v4074_v10 }
 0xaa2   : > { %v2330_v63 = vpop.permute.xlu1 %2329 }
 0xaa3   : > { %v2355_v8 = vsel %vm356_vm0, %v2330_v63, 0.0  ;;  %v1535_v45 = vshll.u32 %v1534_v27, 16  ;;  %v1594_v63 = vcvt.f32.s32 %v4079_v5 }
 0xaa5   : > { %1606 = vmin.xlane.f32.xlu0 %v1605_v44  ;;  %v1564_v44 = vcvt.f32.s32 %v4071_v38 }
 0xaa6   : > { %v2332_v58 = vpop.permute.xlu1 %2331 }
 0xaa7   : > { %v2358_v50 = vsel %vm356_vm0, %v2332_v58, 0.0 }
 0xaaa   : > { %v2336_v20 = vpop.permute.xlu1 %2335 }
 0xaab   : > { %v2364_v49 = vsel %vm356_vm0, %v2336_v20, 0.0 }
 0xab2   : > { %2339 = vrot.lane.b32.xlu1 %v2316_v54, %s2854_s13 }
 0xabb   : > { %2337 = vrot.lane.b32.xlu0 %v2315_v23, %s2854_s13  ;;  %v1565_v23 = vshll.u32 %v1564_v44, 16  ;;  %v1610_v44 = vshll.u32 %v1609_v36, 16  ;;  %v4448_v36 = vld [vmem:[#allocation2_spill] sm:$0xff] }
 0xad6   : > { %2353 = vadd.xlane.f32.xlu1 %v2352_v3 }
 0xada   : > { %2359 = vadd.xlane.f32.xlu1 %v2358_v50  ;;  %2350 = vadd.xlane.f32.xlu0 %v2349_v29  ;;  %v1550_v29 = vshll.u32 %v1549_v55, 16  ;;  %v1624_v50 = vcvt.f32.s32 %v4087_v61 }
 0xade   : > { %2365 = vadd.xlane.f32.xlu1 %v2364_v49  ;;  %2356 = vadd.xlane.f32.xlu0 %v2355_v8  ;;  %v1595_v8 = vshll.u32 %v1594_v63, 16 }
 0xae2   : > { %2362 = vadd.xlane.f32.xlu0 %v2361_v53 }
 0xaed   : > { %v1517_v57 = vpop.xlane.xlu0 %1516 }
 0xaee   : > { %v1518_v60 = vcvt.f32.s32 %v1517_v57  ;;  %v1625_v57 = vshll.u32 %v1624_v50, 16 }
 0xaf0   : > { %v1521_v1 = vadd.s32 %v1520_v12, %v1518_v60 }
 0xaf2   : > { %v4105_v25 = vsel %vm1848_vm4, %v3871_v51, %v1521_v1  ;;  %vm1627_vm7 = vcmp.eq.s32.totalorder %v2949_v34, %v1521_v1 }
 0xb1e   : > { %v1532_v7 = vpop.xlane.xlu1 %1531 }
 0xb1f   : > { %v1533_v46 = vcvt.f32.s32 %v1532_v7 }
 0xb21   : > { %v1536_v54 = vadd.s32 %v1535_v45, %v1533_v46 }
 0xb22   : > { %v1562_v9 = vpop.xlane.xlu0 %1561 }
 0xb23   : > { %v4113_v58 = vsel %vm1848_vm4, %v3864_v14, %v1536_v54  ;;  %v1563_v51 = vcvt.f32.s32 %v1562_v9  ;;  %v1580_v14 = vshll.u32 %v1579_v26, 16  ;;  %vm1628_vm5 = vcmp.eq.s32.totalorder %v2949_v34, %v1536_v54 }
 0xb25   : > { %v1566_v3 = vadd.s32 %v1565_v23, %v1563_v51  ;;  %v1636_v23 = vsel %vm1628_vm5, 3e+38, %v3955_v32  ;;  %v1635_v32 = vsel %vm1627_vm7, 3e+38, %v3876_v52 }
 0xb26   : > { %v1592_v38 = vpop.xlane.xlu1 %1591  ;;  %v1547_v20 = vpop.xlane.xlu0 %1546  ;;  %v1643_v26 = vsel %vm586_vm2, %v1635_v32, inf }
 0xb27   : > { %v4119_v18 = vsel %vm1848_vm4, %v3881_v59, %v1566_v3  ;;  %v1593_v49 = vcvt.f32.s32 %v1592_v38  ;;  %v1548_v5 = vcvt.f32.s32 %v1547_v20  ;;  %vm1630_vm9 = vcmp.eq.s32.totalorder %v2949_v34, %v1566_v3 }
 0xb28   : > { %v1638_v50 = vsel %vm1630_vm9, 3e+38, %v3962_v19 }
 0xb29   : > { %v1596_v24 = vadd.s32 %v1595_v8, %v1593_v49  ;;  %v1551_v53 = vadd.s32 %v1550_v29, %v1548_v5  ;;  %v1652_v52 = vsel %vm586_vm2, %v1638_v50, inf  ;;  %v2374_v8 = vsel %vm1803_vm1, %v3029_v39, %v3291_v2 }
 0xb2a   : > { %v1622_v12 = vpop.xlane.xlu1 %1621  ;;  %v1577_v60 = vpop.xlane.xlu0 %1576  ;;  %v2373_v5 = vsel %vm1803_vm1, %v3033_v40, %v3297_v37 }
 0xb2b   : > { %v4124_v10 = vsel %vm1848_vm4, %v3900_v33, %v1596_v24  ;;  %v4128_v61 = vsel %vm1848_vm4, %v3890_v35, %v1551_v53  ;;  %v1623_v59 = vcvt.f32.s32 %v1622_v12  ;;  %v1578_v27 = vcvt.f32.s32 %v1577_v60 }
 0xb2c   : > { %vm1632_vm6 = vcmp.eq.s32.totalorder %v2949_v34, %v1596_v24  ;;  %vm1629_vm10 = vcmp.eq.s32.totalorder %v2949_v34, %v1551_v53  ;;  %v2375_v53 = vsel %vm1803_vm1, %v3050_v48, %v3307_v4 }
 0xb2d   : > { %v1626_v7 = vadd.s32 %v1625_v57, %v1623_v59  ;;  %v1581_v45 = vadd.s32 %v1580_v14, %v1578_v27  ;;  %v1640_v29 = vsel %vm1632_vm6, 3e+38, %v3968_v6  ;;  %v4161_v3 = vsel %vm1629_vm10, 3e+38, %v3893_v31 }
 0xb2e   : > { %v2340_v46 = vpop.permute.xlu1 %2339  ;;  %v1607_v56 = vpop.xlane.xlu0 %1606  ;;  %v1658_v1 = vsel %vm586_vm2, %v1640_v29, inf  ;;  %v1649_v38 = vsel %vm586_vm2, %v4161_v3, inf  ;;  %v2376_v57 = vsel %vm1803_vm1, %v4448_v36, %v3301_v17  ;;  %vm2430_vm10 = vcmask 220160  }
 0xb2f   : > { %v4133_v55 = vsel %vm1848_vm4, %v3909_v42, %v1626_v7  ;;  %v4137_v33 = vsel %vm1848_vm4, %v3905_v0, %v1581_v45  ;;  %v2370_v35 = vsel %vm356_vm0, %v2340_v46, 0.0  ;;  %v1608_v9 = vcvt.f32.s32 %v1607_v56 }
 0xb30   : > { %2371 = vadd.xlane.f32.xlu1 %v2370_v35  ;;  %v1646_v0 = vsel %vm586_vm2, %v1636_v23, inf  ;;  %vm1634_vm8 = vcmp.eq.s32.totalorder %v2949_v34, %v1626_v7  ;;  %vm1631_vm11 = vcmp.eq.s32.totalorder %v2949_v34, %v1581_v45 }
 0xb31   : > { %v1611_v63 = vadd.s32 %v1610_v44, %v1608_v9 }
 0xb32   : > { %v2338_v54 = vpop.permute.xlu0 %2337 }
 0xb33   : > { %v4145_v42 = vsel %vm1848_vm4, %v3922_v16, %v1611_v63  ;;  %v2367_v51 = vsel %vm356_vm0, %v2338_v54, 0.0  ;;  %v1642_v16 = vsel %vm1634_vm8, 3e+38, %v3974_v30  ;;  %v4167_v30 = vsel %vm1631_vm11, 3e+38, %v3912_v41 }
 0xb34   : > { %1647 = vmin.xlane.f32.xlu1 %v1646_v0  ;;  %2368 = vadd.xlane.f32.xlu0 %v2367_v51  ;;  %v1664_v6 = vsel %vm586_vm2, %v1642_v16, inf  ;;  %vm1633_vm12 = vcmp.eq.s32.totalorder %v2949_v34, %v1611_v63  ;;  %v1655_v19 = vsel %vm586_vm2, %v4167_v30, inf  ;;  %vm2421_vm8 = vcmask 195584  }
 0xb35   : > { %v4173_v20 = vsel %vm1633_vm12, 3e+38, %v3930_v43  ;;  %vm2439_vm11 = vcmask 261120  }
 0xb36   : > { %v1661_v31 = vsel %vm586_vm2, %v4173_v20, inf }
 0xb38   : > { %1659 = vmin.xlane.f32.xlu1 %v1658_v1  ;;  %1644 = vmin.xlane.f32.xlu0 %v1643_v26 }
 0xb3c   : > { %1665 = vmin.xlane.f32.xlu1 %v1664_v6  ;;  %1653 = vmin.xlane.f32.xlu0 %v1652_v52 }
 0xb40   : > { %1650 = vmin.xlane.f32.xlu0 %v1649_v38 }
 0xb44   : > { %1656 = vmin.xlane.f32.xlu0 %v1655_v19 }
 0xb48   : > { %1662 = vmin.xlane.f32.xlu0 %v1661_v31 }
 0xb5f   : > { %v2354_v49 = vpop.xlane.xlu1 %2353 }
 0xb60   : > { %v2382_v41 = vsel %vm1812_vm3, %v2374_v8, %v2354_v49 }
 0xb61   : > { %2399 = vrot.lane.b32.xlu1 %v2382_v41, %s2855_s14 }
 0xb63   : > { %v2351_v43 = vpop.xlane.xlu0 %2350  ;;  %v2360_v14 = vpop.xlane.xlu1 %2359 }
 0xb64   : > { %v2381_v24 = vsel %vm1812_vm3, %v2373_v5, %v2351_v43  ;;  %v2384_v40 = vsel %vm1812_vm3, %v2376_v57, %v2360_v14 }
 0xb65   : > { %2397 = vrot.lane.b32.xlu0 %v2381_v24, %s2855_s14 }
 0xb67   : > { %v2357_v39 = vpop.xlane.xlu0 %2356  ;;  %v4197_v37 = vpop.xlane.xlu1 %2365 }
 0xb68   : > { %v2383_v2 = vsel %vm1812_vm3, %v2375_v53, %v2357_v39 }
 0xb69   : > { %2401 = vrot.lane.b32.xlu1 %v2383_v2, %s2855_s14 }
 0xb6b   : > { %v4199_v12 = vpop.xlane.xlu0 %2362 }
 0xb6d   : > { %2403 = vrot.lane.b32.xlu1 %v2384_v40, %s2855_s14 }
 0xbb9   : > { %v4201_v60 = vpop.xlane.xlu1 %2371 }
 0xbbd   : > { %v1648_v48 = vpop.xlane.xlu1 %1647  ;;  %v4203_v4 = vpop.xlane.xlu0 %2368 }
 0xbbe   : > { %vm1668_vm13 = vcmp.eq.f32.partialorder %v1636_v23, %v1648_v48 }
 0xbbf   : > { %v1676_v59 = vsel %vm1668_vm13, %v2949_v34, 64 }
 0xbc0   : > { %v4207_v27 = vsel %vm586_vm2, %v1676_v59, 2147483647 }
 0xbc1   : > { %v1700_v17 = vshra.s32 %v4207_v27, 16  ;;  %v1660_v7 = vpop.xlane.xlu1 %1659  ;;  %v1645_v45 = vpop.xlane.xlu0 %1644 }
 0xbc2   : > { %vm1672_vm14 = vcmp.eq.f32.partialorder %v1640_v29, %v1660_v7  ;;  %vm1667_vm15 = vcmp.eq.f32.partialorder %v1635_v32, %v1645_v45  ;;  %v4450_v7 = vld [vmem:[#allocation3_spill] sm:$0xff] }
 0xbc3   : > { %v1680_v44 = vsel %vm1672_vm14, %v2949_v34, 64  ;;  %v1675_v46 = vsel %vm1667_vm15, %v2949_v34, 64  ;;  %v4212_v56 = vcvt.s32.f32 %v1700_v17  ;;  %v4449_v17 = vld [vmem:[#allocation7_spill] sm:$0xff] }
 0xbc4   : > { %v4215_v35 = vsel %vm586_vm2, %v1680_v44, 2147483647  ;;  %v4218_v9 = vsel %vm586_vm2, %v1675_v46, 2147483647  ;;  %v2378_v45 = vsel %vm1803_vm1, %v4450_v7, %v4449_v17 }
 0xbc5   : > { %v1760_v23 = vshra.s32 %v4215_v35, 16  ;;  %v1685_v63 = vshra.s32 %v4218_v9, 16  ;;  %v1666_v54 = vpop.xlane.xlu1 %1665  ;;  %1703 = vmin.xlane.f32.xlu1 %v4212_v56  ;;  %v1654_v51 = vpop.xlane.xlu0 %1653  ;;  %v2386_v46 = vsel %vm1812_vm3, %v2378_v45, %v4197_v37  ;;  %v4454_v45 = vld [vmem:[#allocation5_spill] sm:$0xff] }
 0xbc6   : > { %vm1674_vm4 = vcmp.eq.f32.partialorder %v1642_v16, %v1666_v54  ;;  %vm1670_vm5 = vcmp.eq.f32.partialorder %v1638_v50, %v1654_v51  ;;  %v4451_v51 = vld [vmem:[#allocation8_spill] sm:$0xff] }
 0xbc7   : > { %v1682_v0 = vsel %vm1674_vm4, %v2949_v34, 64  ;;  %v1678_v29 = vsel %vm1670_vm5, %v2949_v34, 64  ;;  %v4225_v32 = vcvt.s32.f32 %v1760_v23  ;;  %v4227_v1 = vcvt.s32.f32 %v1685_v63 }
 0xbc8   : > { %v4230_v26 = vsel %vm586_vm2, %v1682_v0, 2147483647  ;;  %v4233_v6 = vsel %vm586_vm2, %v1678_v29, 2147483647  ;;  %v4452_v0 = vld [vmem:[#allocation4_spill] sm:$0xff]  ;;  %v1699_v29 = vand.u32 65535, %v4207_v27 }
 0xbc9   : > { %v1790_v52 = vshra.s32 %v4230_v26, 16  ;;  %v1730_v38 = vshra.s32 %v4233_v6, 16  ;;  %1763 = vmin.xlane.f32.xlu1 %v4225_v32  ;;  %1688 = vmin.xlane.f32.xlu0 %v4227_v1  ;;  %v1651_v16 = vpop.xlane.xlu0 %1650  ;;  %v1759_v27 = vand.u32 65535, %v4215_v35 }
 0xbca   : > { %vm1669_vm6 = vcmp.eq.f32.partialorder %v4161_v3, %v1651_v16  ;;  %v1701_v16 = vcvt.s32.f32 %v1699_v29 }
 0xbcb   : > { %v1677_v50 = vsel %vm1669_vm6, %v2949_v34, 64  ;;  %v4241_v19 = vcvt.s32.f32 %v1790_v52  ;;  %v4243_v31 = vcvt.s32.f32 %v1730_v38  ;;  %v1684_v52 = vand.u32 65535, %v4218_v9 }
 0xbcc   : > { %v4246_v8 = vsel %vm586_vm2, %v1677_v50, 2147483647  ;;  %v1729_v50 = vand.u32 65535, %v4233_v6 }
 0xbcd   : > { %v1715_v49 = vshra.s32 %v4246_v8, 16  ;;  %1793 = vmin.xlane.f32.xlu1 %v4241_v19  ;;  %1733 = vmin.xlane.f32.xlu0 %v4243_v31  ;;  %v1657_v41 = vpop.xlane.xlu0 %1656  ;;  %v1714_v9 = vand.u32 65535, %v4246_v8  ;;  %v1761_v8 = vcvt.s32.f32 %v1759_v27 }
 0xbce   : > { %vm1671_vm7 = vcmp.eq.f32.partialorder %v4167_v30, %v1657_v41 }
 0xbcf   : > { %v1679_v3 = vsel %vm1671_vm7, %v2949_v34, 64  ;;  %v4253_v5 = vcvt.s32.f32 %v1715_v49  ;;  %vm1857_vm7 = vcmask 56320  }
 0xbd0   : > { %v4256_v43 = vsel %vm586_vm2, %v1679_v3, 2147483647  ;;  %v1686_v3 = vcvt.s32.f32 %v1684_v52 }
 0xbd1   : > { %v1745_v24 = vshra.s32 %v4256_v43, 16  ;;  %1718 = vmin.xlane.f32.xlu0 %v4253_v5  ;;  %v1663_v53 = vpop.xlane.xlu0 %1662 }
 0xbd2   : > { %vm1673_vm9 = vcmp.eq.f32.partialorder %v4173_v20, %v1663_v53 }
 0xbd3   : > { %v1681_v30 = vsel %vm1673_vm9, %v2949_v34, 64  ;;  %v2400_v39 = vpop.permute.xlu1 %2399  ;;  %v4268_v2 = vcvt.s32.f32 %v1745_v24 }
 0xbd4   : > { %v4271_v14 = vsel %vm586_vm2, %v1681_v30, 2147483647  ;;  %v2423_v20 = vsel %vm2421_vm8, %v3842_v28, %v2400_v39  ;;  %v1744_v30 = vand.u32 65535, %v4256_v43 }
 0xbd5   : > { %v1775_v36 = vshra.s32 %v4271_v14, 16  ;;  %v2432_v57 = vsel %vm2430_vm10, %v2423_v20, 0.0  ;;  %1748 = vmin.xlane.f32.xlu0 %v4268_v2  ;;  %v1716_v20 = vcvt.s32.f32 %v1714_v9 }
 0xbd6   : > { %2441 = vst.msk [vmem:[%s4265_s17 + $0x8] sm:$0xff] %vm2439_vm11, %v2432_v57 }
 0xbd7   : > { %v2398_v34 = vpop.permute.xlu0 %2397  ;;  %v4280_v40 = vcvt.s32.f32 %v1775_v36 }
 0xbd8   : > { %v2422_v48 = vsel %vm2421_vm8, %v3852_v22, %v2398_v34 }
 0xbd9   : > { %v2431_v59 = vsel %vm2430_vm10, %v2422_v48, 0.0  ;;  %1778 = vmin.xlane.f32.xlu0 %v4280_v40 }
 0xbda   : > { %2440 = vst.msk [vmem:[%s4265_s17] sm:$0xff] %vm2439_vm11, %v2431_v59 }
 0xbdb   : > { %v2402_v28 = vpop.permute.xlu1 %2401 }
 0xbdc   : > { %v2424_v44 = vsel %vm2421_vm8, %v3925_v21, %v2402_v28  ;;  %v2377_v21 = vsel %vm1803_vm1, %v4452_v0, %v4451_v51 }
 0xbdd   : > { %v2433_v23 = vsel %vm2430_vm10, %v2424_v44, 0.0  ;;  %v2385_v37 = vsel %vm1812_vm3, %v2377_v21, %v4199_v12 }
 0xbde   : > { %2442 = vst.msk [vmem:[%s4265_s17 + $0x10] sm:$0xff] %vm2439_vm11, %v2433_v23  ;;  %2407 = vrot.lane.b32.xlu1 %v2386_v46, %s2855_s14  ;;  %v4456_v23 = vld [vmem:[#allocation6_spill] sm:$0xff] }
 0xbdf   : > { %v2404_v22 = vpop.permute.xlu1 %2403 }
 0xbe0   : > { %v2425_v63 = vsel %vm2421_vm8, %v3982_v13, %v2404_v22 }
 0xbe1   : > { %v2434_v54 = vsel %vm2430_vm10, %v2425_v63, 0.0 }
 0xbe2   : > { %2443 = vst.msk [vmem:[%s4265_s17 + $0x18] sm:$0xff] %vm2439_vm11, %v2434_v54 }
 0xbef   : > { %2405 = vrot.lane.b32.xlu0 %v2385_v37, %s2855_s14 }
 0xc4e   : > { %v1704_v38 = vpop.xlane.xlu1 %1703 }
 0xc4f   : > { %vm1705_vm2 = vcmp.eq.f32.partialorder %v4212_v56, %v1704_v38  ;;  %v1731_v56 = vcvt.s32.f32 %v1729_v50  ;;  %v1710_v63 = vcvt.f32.s32 %v1704_v38 }
 0xc50   : > { %v1706_v13 = vsel %vm1705_vm2, %v1701_v16, inf }
 0xc51   : > { %1707 = vmin.xlane.f32.xlu1 %v1706_v13  ;;  %v1711_v51 = vshll.u32 %v1710_v63, 16 }
 0xc52   : > { %v4314_v49 = vpop.xlane.xlu1 %1763  ;;  %v1689_v41 = vpop.xlane.xlu0 %1688 }
 0xc53   : > { %vm1690_vm12 = vcmp.eq.f32.partialorder %v4227_v1, %v1689_v41  ;;  %vm1765_vm14 = vcmp.eq.f32.partialorder %v4225_v32, %v4314_v49  ;;  %v1789_v1 = vand.u32 65535, %v4230_v26  ;;  %v1774_v26 = vand.u32 65535, %v4271_v14 }
 0xc54   : > { %v1691_v12 = vsel %vm1690_vm12, %v1686_v3, inf  ;;  %v1766_v57 = vsel %vm1765_vm14, %v1761_v8, inf  ;;  %v1695_v0 = vcvt.f32.s32 %v1689_v41  ;;  %v1770_v13 = vcvt.f32.s32 %v4314_v49 }
 0xc55   : > { %1692 = vmin.xlane.f32.xlu0 %v1691_v12  ;;  %v1791_v34 = vcvt.s32.f32 %v1789_v1  ;;  %v1776_v28 = vcvt.s32.f32 %v1774_v26 }
 0xc56   : > { %v4319_v24 = vpop.xlane.xlu1 %1793  ;;  %v1734_v53 = vpop.xlane.xlu0 %1733  ;;  %v1696_v29 = vshll.u32 %v1695_v0, 16 }
 0xc57   : > { %vm1735_vm13 = vcmp.eq.f32.partialorder %v4243_v31, %v1734_v53  ;;  %vm1795_vm4 = vcmp.eq.f32.partialorder %v4241_v19, %v4319_v24  ;;  %v1740_v52 = vcvt.f32.s32 %v1734_v53  ;;  %v1771_v53 = vshll.u32 %v1770_v13, 16 }
 0xc58   : > { %v1736_v6 = vsel %vm1735_vm13, %v1731_v56, inf }
 0xc59   : > { %1737 = vmin.xlane.f32.xlu1 %v1736_v6  ;;  %v1741_v41 = vshll.u32 %v1740_v52, 16 }
 0xc5a   : > { %v2408_v39 = vpop.permute.xlu1 %2407  ;;  %v4326_v35 = vpop.xlane.xlu0 %1718 }
 0xc5b   : > { %v2427_v36 = vsel %vm2421_vm8, %v3990_v15, %v2408_v39  ;;  %vm1720_vm15 = vcmp.eq.f32.partialorder %v4253_v5, %v4326_v35  ;;  %v1746_v15 = vcvt.s32.f32 %v1744_v30  ;;  %v1796_v5 = vsel %vm1795_vm4, %v1791_v34, inf }
 0xc5c   : > { %v2436_v31 = vsel %vm2430_vm10, %v2427_v36, 0.0  ;;  %v1721_v32 = vsel %vm1720_vm15, %v1716_v20, inf  ;;  %v1725_v3 = vcvt.f32.s32 %v4326_v35 }
 0xc5d   : > { %2445 = vst.msk [vmem:[%s4265_s17 + $0x28] sm:$0xff] %vm2439_vm11, %v2436_v31  ;;  %1767 = vmin.xlane.f32.xlu1 %v1766_v57  ;;  %1722 = vmin.xlane.f32.xlu0 %v1721_v32 }
 0xc5e   : > { %v1749_v43 = vpop.xlane.xlu0 %1748  ;;  %v1726_v30 = vshll.u32 %v1725_v3, 16 }
 0xc5f   : > { %vm1750_vm5 = vcmp.eq.f32.partialorder %v4268_v2, %v1749_v43  ;;  %v4453_v2 = vld [vmem:[#allocation9_spill] sm:$0xff]  ;;  %v1755_v56 = vcvt.f32.s32 %v1749_v43 }
 0xc60   : > { %v1751_v48 = vsel %vm1750_vm5, %v1746_v15, inf  ;;  %v2380_v44 = vsel %vm1803_vm1, %v4454_v45, %v4453_v2 }
 0xc61   : > { %1797 = vmin.xlane.f32.xlu1 %v1796_v5  ;;  %1752 = vmin.xlane.f32.xlu0 %v1751_v48  ;;  %v2388_v46 = vsel %vm1812_vm3, %v2380_v44, %v4201_v60  ;;  %v1756_v36 = vshll.u32 %v1755_v56, 16 }
 0xc62   : > { %v4339_v59 = vpop.xlane.xlu0 %1778 }
 0xc63   : > { %vm1780_vm6 = vcmp.eq.f32.partialorder %v4280_v40, %v4339_v59  ;;  %v4455_v40 = vld [vmem:[#allocation10_spill] sm:$0xff]  ;;  %v1785_v31 = vcvt.f32.s32 %v4339_v59 }
 0xc64   : > { %v1781_v19 = vsel %vm1780_vm6, %v1776_v28, inf  ;;  %v2379_v22 = vsel %vm1803_vm1, %v4456_v23, %v4455_v40 }
 0xc65   : > { %1782 = vmin.xlane.f32.xlu0 %v1781_v19  ;;  %v1786_v5 = vshll.u32 %v1785_v31, 16 }
 0xc66   : > { %v2406_v17 = vpop.permute.xlu0 %2405 }
 0xc67   : > { %v2426_v14 = vsel %vm2421_vm8, %v3938_v47, %v2406_v17  ;;  %v2387_v47 = vsel %vm1812_vm3, %v2379_v22, %v4203_v4 }
 0xc68   : > { %v2435_v7 = vsel %vm2430_vm10, %v2426_v14, 0.0 }
 0xc69   : > { %2444 = vst.msk [vmem:[%s4265_s17 + $0x20] sm:$0xff] %vm2439_vm11, %v2435_v7 }
 0xc72   : > { %2411 = vrot.lane.b32.xlu1 %v2388_v46, %s2855_s14 }
 0xc7b   : > { %2409 = vrot.lane.b32.xlu0 %v2387_v47, %s2855_s14 }
 0xcda   : > { %v1708_v54 = vpop.xlane.xlu1 %1707 }
 0xcdb   : > { %v1709_v21 = vcvt.f32.s32 %v1708_v54 }
 0xcdd   : > { %v1712_v60 = vadd.s32 %v1711_v51, %v1709_v21 }
 0xcde   : > { %v1693_v37 = vpop.xlane.xlu0 %1692 }
 0xcdf   : > { %v1859_v4 = vsel %vm1857_vm7, %v4113_v58, %v1712_v60  ;;  %v1694_v38 = vcvt.f32.s32 %v1693_v37  ;;  %v1800_v58 = vcvt.f32.s32 %v4319_v24 }
 0xce0   : > { %1867 = vst.msk [vmem:[%s4364_s24 + $0x8] sm:$0xff] %vm356_vm0, %v1859_v4 }
 0xce1   : > { %v1697_v16 = vadd.s32 %v1696_v29, %v1694_v38  ;;  %v1801_v20 = vshll.u32 %v1800_v58, 16 }
 0xce2   : > { %v1738_v50 = vpop.xlane.xlu1 %1737 }
 0xce3   : > { %v1858_v12 = vsel %vm1857_vm7, %v4105_v25, %v1697_v16  ;;  %v1739_v27 = vcvt.f32.s32 %v1738_v50 }
 0xce4   : > { %1866 = vst.msk [vmem:[%s4364_s24] sm:$0xff] %vm356_vm0, %v1858_v12 }
 0xce5   : > { %v1742_v9 = vadd.s32 %v1741_v41, %v1739_v27 }
 0xce6   : > { %v1768_v6 = vpop.xlane.xlu1 %1767  ;;  %v1723_v1 = vpop.xlane.xlu0 %1722 }
 0xce7   : > { %v1861_v49 = vsel %vm1857_vm7, %v4119_v18, %v1742_v9  ;;  %v1769_v39 = vcvt.f32.s32 %v1768_v6  ;;  %v1724_v35 = vcvt.f32.s32 %v1723_v1 }
 0xce8   : > { %1869 = vst.msk [vmem:[%s4364_s24 + $0x18] sm:$0xff] %vm356_vm0, %v1861_v49 }
 0xce9   : > { %v1772_v25 = vadd.s32 %v1771_v53, %v1769_v39  ;;  %v1727_v8 = vadd.s32 %v1726_v30, %v1724_v35 }
 0xcea   : > { %v1798_v24 = vpop.xlane.xlu1 %1797  ;;  %v1753_v57 = vpop.xlane.xlu0 %1752 }
 0xceb   : > { %v1863_v32 = vsel %vm1857_vm7, %v4124_v10, %v1772_v25  ;;  %v1860_v18 = vsel %vm1857_vm7, %v4128_v61, %v1727_v8  ;;  %v1799_v26 = vcvt.f32.s32 %v1798_v24  ;;  %v1754_v43 = vcvt.f32.s32 %v1753_v57 }
 0xcec   : > { %1871 = vst.msk [vmem:[%s4364_s24 + $0x28] sm:$0xff] %vm356_vm0, %v1863_v32  ;;  %1868 = vst.msk [vmem:[%s4364_s24 + $0x10] sm:$0xff] %vm356_vm0, %v1860_v18 }
 0xced   : > { %v1802_v34 = vadd.s32 %v1801_v20, %v1799_v26  ;;  %v1757_v15 = vadd.s32 %v1756_v36, %v1754_v43 }
 0xcee   : > { %v2412_v48 = vpop.permute.xlu1 %2411  ;;  %v1783_v59 = vpop.xlane.xlu0 %1782 }
 0xcef   : > { %v1865_v10 = vsel %vm1857_vm7, %v4133_v55, %v1802_v34  ;;  %v1862_v61 = vsel %vm1857_vm7, %v4137_v33, %v1757_v15  ;;  %v2429_v28 = vsel %vm2421_vm8, %v3999_v11, %v2412_v48  ;;  %v1784_v19 = vcvt.f32.s32 %v1783_v59 }
 0xcf0   : > { %1873 = vst.msk [vmem:[%s4364_s24 + $0x38] sm:$0xff] %vm356_vm0, %v1865_v10  ;;  %1870 = vst.msk [vmem:[%s4364_s24 + $0x20] sm:$0xff] %vm356_vm0, %v1862_v61  ;;  %v2438_v17 = vsel %vm2430_vm10, %v2429_v28, 0.0 }
 0xcf1   : > { %2447 = vst.msk [vmem:[%s4265_s17 + $0x38] sm:$0xff] %vm2439_vm11, %v2438_v17  ;;  %v1787_v14 = vadd.s32 %v1786_v5, %v1784_v19 }
 0xcf2   : > { %v2410_v7 = vpop.permute.xlu0 %2409 }
 0xcf3   : > { %v1864_v55 = vsel %vm1857_vm7, %v4145_v42, %v1787_v14  ;;  %v2428_v33 = vsel %vm2421_vm8, %v3947_v62, %v2410_v7 }
 0xcf4   : > { %1872 = vst.msk [vmem:[%s4364_s24 + $0x30] sm:$0xff] %vm356_vm0, %v1864_v55  ;;  %v2437_v11 = vsel %vm2430_vm10, %v2428_v33, 0.0 }
 0xcf5   : > { %2446 = vst.msk [vmem:[%s4265_s17 + $0x30] sm:$0xff] %vm2439_vm11, %v2437_v11 }
 0xcf6 PF: > { %s16_s20 = sadd.s32 1, %s2849_s20   ;;  %s4457_s18 = smov %s2845_s19 }
 0xcf7   : > { %p13_p5 = scmp.ge.s32.totalorder %s16_s20, 4   ;;  %s4458_s19 = smov %s4460_s21 }
 0xcf9   :  { %15 = sbr.rel (!%p13_p5) target bundleno = 2 (0x2), region = 87 }

</bundles_post_ra>
